<compile_context>
chip_gen: v5e
topology: v5e:2x2
jax: 0.10.0
libtpu: 0.0.40
codegen_flags: <defaults>
</compile_context>

<pallas_src>
import jax
import jax.numpy as jnp
from jax import lax
from jax.experimental import pallas as pl
from jax.experimental.pallas import tpu as pltpu


def _critic_kernel(x_ref, w1_ref, b1_ref, w2_ref, b2_ref, w3_ref, b3_ref, o_ref):
    # Standard contraction: (H, K) @ (K, TILE_B) -> (H, TILE_B), bf16 MXU inputs,
    # f32 accumulation.
    dn = (((1,), (0,)), ((), ()))

    # Layer 1: h1^T = W1 @ x^T + b1      -> (H, TILE_B)
    x = x_ref[...].astype(jnp.bfloat16)                    # no-op if already bf16
    h1 = lax.dot_general(w1_ref[...], x, dn, preferred_element_type=jnp.float32)
    h1 = jnp.maximum(h1 + b1_ref[...], 0.0)                # f32 VPU

    # Layer 2: h2^T = W2 @ h1^T + b2     -> (H, TILE_B)
    h2 = lax.dot_general(w2_ref[...], h1.astype(jnp.bfloat16), dn,
                         preferred_element_type=jnp.float32)
    h2 = jnp.maximum(h2 + b2_ref[...], 0.0)                # f32 VPU

    # Layer 3 (output width 1): per-lane multiply + sublane reduce instead of an
    # MXU matmul with N=1.  Result is lane-dense (1, TILE_B).
    q = jnp.sum(h2 * w3_ref[...], axis=0, keepdims=True) + b3_ref[...]
    o_ref[...] = q.astype(o_ref.dtype)


def critic_forward(state, action, params, *, tile_b=2048):
    """Pallas TPU equivalent of Critic.forward(state, action) -> (B, 1) float32."""
    w1, b1, w2, b2, w3, b3 = params
    B, S = state.shape
    A = action.shape[1]
    H = w2.shape[0]
    K = S + A

    # Accept bf16 inputs directly (halves input DMA bytes); otherwise keep f32 and
    # let the kernel do the bf16 cast (wrapper-side pre-cast would add an HBM pass).
    if state.dtype == jnp.bfloat16 and action.dtype == jnp.bfloat16:
        in_dtype = jnp.bfloat16
    else:
        in_dtype = jnp.float32

    # Batch tile selection:
    #  * at least 256 lanes (unmasked lane-dense output stores, full MXU N tile)
    #  * at most `tile_b` (default 2048) to amortize per-grid-step overhead
    #  * when the batch allows it, keep the grid >= 2 steps so both v7x TCs get work.
    MIN_TB = 256
    tile_b = max(128, (tile_b // 128) * 128)
    tb = min(tile_b, max(MIN_TB, pl.cdiv(B, MIN_TB) * MIN_TB))
    if B > 2 * MIN_TB and pl.cdiv(B, tb) < 2:
        tb = max(MIN_TB, pl.cdiv(pl.cdiv(B, 2), MIN_TB) * MIN_TB)
    b_pad = pl.cdiv(B, tb) * tb

    # Single transposed K=S+A operand: (S+A, B_pad).  Lane axis = batch (dense DMA),
    # and layer 1 becomes one standard-contraction matmul in the kernel.
    x_t = jnp.concatenate(
        [state.astype(in_dtype).T, action.astype(in_dtype).T], axis=0)
    if b_pad != B:
        x_t = jnp.pad(x_t, ((0, 0), (0, b_pad - B)))

    grid = (b_pad // tb,)
    resident = lambda i: (0, 0)   # weights / biases stay VMEM-resident across steps

    out = pl.pallas_call(
        _critic_kernel,
        out_shape=jax.ShapeDtypeStruct((1, b_pad), jnp.float32),
        grid=grid,
        in_specs=[
            pl.BlockSpec((K, tb), lambda i: (0, i)),   # x^T tile (batch lane-dense)
            pl.BlockSpec((H, K), resident),            # W1       (bf16)
            pl.BlockSpec((H, 1), resident),            # b1       (f32)
            pl.BlockSpec((H, H), resident),            # W2       (bf16)
            pl.BlockSpec((H, 1), resident),            # b2       (f32)
            pl.BlockSpec((H, 1), resident),            # w3 col   (f32)
            pl.BlockSpec((1, 1), resident),            # b3       (f32)
        ],
        out_specs=pl.BlockSpec((1, tb), lambda i: (0, i)),
        compiler_params=pltpu.CompilerParams(
            dimension_semantics=("parallel",),         # shard batch axis across TCs
        ),
    )(x_t, w1, b1, w2, b2, w3, b3)

    # Lane-dense (1, B_pad) -> (B, 1) to match the PyTorch module output.
    # (Padded batch columns are sliced off here; keep this slice.)
    return out[0, :B][:, None]


def init_critic_params(key, state_size, action_size, hidden_size):
    """nn.Linear-style init (uniform +/- 1/sqrt(fan_in)), PyTorch (out, in) layout.

    W1/W2 are stored bf16 (MXU inputs); biases and the width-1 output weight stay
    f32 (used on the VPU with f32 accumulation).
    """
    d_in = state_size + action_size
    ks = jax.random.split(key, 6)

    def linear(kw, kb, fan_in, fan_out):
        bound = 1.0 / jnp.sqrt(jnp.float32(fan_in))
        w = jax.random.uniform(kw, (fan_out, fan_in), jnp.float32, -bound, bound)
        b = jax.random.uniform(kb, (fan_out, 1), jnp.float32, -bound, bound)
        return w, b

    w1, b1 = linear(ks[0], ks[1], d_in, hidden_size)
    w2, b2 = linear(ks[2], ks[3], hidden_size, hidden_size)
    w3, b3 = linear(ks[4], ks[5], hidden_size, 1)

    w1 = w1.astype(jnp.bfloat16)    # (H, S+A) — single merged layer-1 weight
    w2 = w2.astype(jnp.bfloat16)    # (H, H)
    w3_col = w3.T                   # (H, 1) f32 column for the VPU/XLU reduction
    return (w1, b1, w2, b2, w3_col, b3)


if __name__ == "__main__":
    # Small deterministic example consistent with the module (Ant-like sizes,
    # module-default hidden width).
    batch = 64
    state_size = 27
    action_size = 8
    hidden_size = 256

    key = jax.random.PRNGKey(0)
    k_state, k_action, k_params = jax.random.split(key, 3)
    state = jax.random.normal(k_state, (batch, state_size), jnp.float32)
    action = jax.random.normal(k_action, (batch, action_size), jnp.float32)
    params = init_critic_params(k_params, state_size, action_size, hidden_size)

    q = critic_forward(state, action, params)
    jax.block_until_ready(q)
    assert q.shape == (batch, 1)

    # Pure-JAX reference using the same bf16 weights / f32 accumulation.
    w1, b1, w2, b2, w3, b3 = params
    x = jnp.concatenate([state, action], axis=-1).astype(jnp.bfloat16)
    h1 = jnp.maximum(
        jnp.dot(x, w1.T, preferred_element_type=jnp.float32) + b1[:, 0], 0.0)
    h2 = jnp.maximum(
        jnp.dot(h1.astype(jnp.bfloat16), w2.T,
                preferred_element_type=jnp.float32) + b2[:, 0], 0.0)
    ref = h2 @ w3 + b3[0, 0]                                        # (B, 1) f32

    assert jnp.allclose(q, ref, rtol=2e-2, atol=2e-2), (q, ref)
    print("KERNEL_OK")
</pallas_src>

<mosaic_0001>
module attributes {stable_mosaic.version = 11 : i64} {
  func.func @_critic_kernel(%arg0: i32, %arg1: memref<35x256xf32, #tpu.memory_space<vmem>>, %arg2: memref<256x35xbf16, #tpu.memory_space<vmem>>, %arg3: memref<256x1xf32, #tpu.memory_space<vmem>>, %arg4: memref<256x256xbf16, #tpu.memory_space<vmem>>, %arg5: memref<256x1xf32, #tpu.memory_space<vmem>>, %arg6: memref<256x1xf32, #tpu.memory_space<vmem>>, %arg7: memref<1x1xf32, #tpu.memory_space<vmem>>, %arg8: memref<1x256xf32, #tpu.memory_space<vmem>>) attributes {dimension_semantics = [#tpu.dimension_semantics<parallel>], iteration_bounds = array<i64: 1>, scalar_prefetch = 0 : i64, scratch_operands = 0 : i64, tpu.core_type = #tpu.core_type<tc>, window_params = [{transform_indices = @transform_0, window_bounds = array<i64: 35, 256>}, {pipeline_mode = #tpu.pipeline_mode<synchronous>, transform_indices = @transform_1, window_bounds = array<i64: 256, 35>}, {pipeline_mode = #tpu.pipeline_mode<synchronous>, transform_indices = @transform_2, window_bounds = array<i64: 256, 1>}, {pipeline_mode = #tpu.pipeline_mode<synchronous>, transform_indices = @transform_3, window_bounds = array<i64: 256, 256>}, {pipeline_mode = #tpu.pipeline_mode<synchronous>, transform_indices = @transform_4, window_bounds = array<i64: 256, 1>}, {pipeline_mode = #tpu.pipeline_mode<synchronous>, transform_indices = @transform_5, window_bounds = array<i64: 256, 1>}, {pipeline_mode = #tpu.pipeline_mode<synchronous>, transform_indices = @transform_6, window_bounds = array<i64: 1, 1>}, {transform_indices = @transform_7, window_bounds = array<i64: 1, 256>}]} {
    %c0 = arith.constant 0 : index
    %c0_0 = arith.constant 0 : index
    %0 = vector.load %arg1[%c0, %c0_0] : memref<35x256xf32, #tpu.memory_space<vmem>>, vector<35x256xf32>
    %1 = arith.truncf %0 : vector<35x256xf32> to vector<35x256xbf16>
    %c0_1 = arith.constant 0 : index
    %c0_2 = arith.constant 0 : index
    %2 = vector.load %arg2[%c0_1, %c0_2] : memref<256x35xbf16, #tpu.memory_space<vmem>>, vector<256x35xbf16>
    %cst = arith.constant dense<0.000000e+00> : vector<256x256xf32>
    %3 = tpu.matmul %2, %1, %cst {dimension_numbers = #tpu.dot_dimension_numbers<[1], [0], [0], [1], [0, 0, 1, 1], [], []>} : vector<256x35xbf16>, vector<35x256xbf16>, vector<256x256xf32> -> vector<256x256xf32>
    %c0_3 = arith.constant 0 : index
    %c0_4 = arith.constant 0 : index
    %4 = vector.load %arg3[%c0_3, %c0_4] : memref<256x1xf32, #tpu.memory_space<vmem>>, vector<256x1xf32>
    %5 = vector.broadcast %4 : vector<256x1xf32> to vector<256x256xf32>
    %6 = arith.addf %3, %5 : vector<256x256xf32>
    %cst_5 = arith.constant 0.000000e+00 : f32
    %7 = vector.broadcast %cst_5 : f32 to vector<256x256xf32>
    %8 = arith.maximumf %6, %7 : vector<256x256xf32>
    %c0_6 = arith.constant 0 : index
    %c0_7 = arith.constant 0 : index
    %9 = vector.load %arg4[%c0_6, %c0_7] : memref<256x256xbf16, #tpu.memory_space<vmem>>, vector<256x256xbf16>
    %10 = arith.truncf %8 : vector<256x256xf32> to vector<256x256xbf16>
    %cst_8 = arith.constant dense<0.000000e+00> : vector<256x256xf32>
    %11 = tpu.matmul %9, %10, %cst_8 {dimension_numbers = #tpu.dot_dimension_numbers<[1], [0], [0], [1], [0, 0, 1, 1], [], []>} : vector<256x256xbf16>, vector<256x256xbf16>, vector<256x256xf32> -> vector<256x256xf32>
    %c0_9 = arith.constant 0 : index
    %c0_10 = arith.constant 0 : index
    %12 = vector.load %arg5[%c0_9, %c0_10] : memref<256x1xf32, #tpu.memory_space<vmem>>, vector<256x1xf32>
    %13 = vector.broadcast %12 : vector<256x1xf32> to vector<256x256xf32>
    %14 = arith.addf %11, %13 : vector<256x256xf32>
    %cst_11 = arith.constant 0.000000e+00 : f32
    %15 = vector.broadcast %cst_11 : f32 to vector<256x256xf32>
    %16 = arith.maximumf %14, %15 : vector<256x256xf32>
    %c0_12 = arith.constant 0 : index
    %c0_13 = arith.constant 0 : index
    %17 = vector.load %arg6[%c0_12, %c0_13] : memref<256x1xf32, #tpu.memory_space<vmem>>, vector<256x1xf32>
    %18 = vector.broadcast %17 : vector<256x1xf32> to vector<256x256xf32>
    %19 = arith.mulf %16, %18 : vector<256x256xf32>
    %cst_14 = arith.constant dense<0.000000e+00> : vector<256xf32>
    %20 = vector.multi_reduction <add>, %19, %cst_14 [0] : vector<256x256xf32> to vector<256xf32>
    %21 = vector.shape_cast %20 : vector<256xf32> to vector<1x256xf32>
    %c0_15 = arith.constant 0 : index
    %c0_16 = arith.constant 0 : index
    %22 = vector.load %arg7[%c0_15, %c0_16] : memref<1x1xf32, #tpu.memory_space<vmem>>, vector<1x1xf32>
    %23 = vector.broadcast %22 : vector<1x1xf32> to vector<1x256xf32>
    %24 = arith.addf %21, %23 : vector<1x256xf32>
    %c0_17 = arith.constant 0 : index
    %c0_18 = arith.constant 0 : index
    %25 = vector.load %arg8[%c0_17, %c0_18] : memref<1x256xf32, #tpu.memory_space<vmem>>, vector<1x256xf32>
    tpu.vector_store %arg8[%c0_17, %c0_18], %24 {strides = array<i32>} : memref<1x256xf32, #tpu.memory_space<vmem>>, vector<1x256xf32>,
    return
  }
  func.func @transform_0(%arg0: i32) -> (i32, i32) {
    %c0_i32 = arith.constant 0 : i32
    %c0_i32_0 = arith.constant 0 : i32
    return %c0_i32, %arg0 : i32, i32
  }
  func.func @transform_1(%arg0: i32) -> (i32, i32) {
    %c0_i32 = arith.constant 0 : i32
    %c0_i32_0 = arith.constant 0 : i32
    %c0_i32_1 = arith.constant 0 : i32
    return %c0_i32, %c0_i32_0 : i32, i32
  }
  func.func @transform_2(%arg0: i32) -> (i32, i32) {
    %c0_i32 = arith.constant 0 : i32
    %c0_i32_0 = arith.constant 0 : i32
    %c0_i32_1 = arith.constant 0 : i32
    return %c0_i32, %c0_i32_0 : i32, i32
  }
  func.func @transform_3(%arg0: i32) -> (i32, i32) {
    %c0_i32 = arith.constant 0 : i32
    %c0_i32_0 = arith.constant 0 : i32
    %c0_i32_1 = arith.constant 0 : i32
    return %c0_i32, %c0_i32_0 : i32, i32
  }
  func.func @transform_4(%arg0: i32) -> (i32, i32) {
    %c0_i32 = arith.constant 0 : i32
    %c0_i32_0 = arith.constant 0 : i32
    %c0_i32_1 = arith.constant 0 : i32
    return %c0_i32, %c0_i32_0 : i32, i32
  }
  func.func @transform_5(%arg0: i32) -> (i32, i32) {
    %c0_i32 = arith.constant 0 : i32
    %c0_i32_0 = arith.constant 0 : i32
    %c0_i32_1 = arith.constant 0 : i32
    return %c0_i32, %c0_i32_0 : i32, i32
  }
  func.func @transform_6(%arg0: i32) -> (i32, i32) {
    %c0_i32 = arith.constant 0 : i32
    %c0_i32_0 = arith.constant 0 : i32
    %c0_i32_1 = arith.constant 0 : i32
    return %c0_i32, %c0_i32_0 : i32, i32
  }
  func.func @transform_7(%arg0: i32) -> (i32, i32) {
    %c0_i32 = arith.constant 0 : i32
    %c0_i32_0 = arith.constant 0 : i32
    return %c0_i32, %arg0 : i32, i32
  }
}

</mosaic_0001>

<bundles_post_ra>
// kernel: tpu_custom_call.1
= control target key start
LH: loop header
LB: loop body
LE: loop exit
PB: predicated region body
PF: predicated region fallthrough
CT: control target
= control target key end

     0   :  { %s3270_s0 = inlined_call_operand.vmem [shape: f32[35,256], index: 0, kind: input, shape index: {}]   ;;  %s3271_s1 = inlined_call_operand.vmem [shape: bf16[256,35], index: 1, kind: input, shape index: {}]   ;;  %s3272_s2 = inlined_call_operand.vmem [shape: f32[256,1], index: 2, kind: input, shape index: {}]   ;;  %s3273_s3 = inlined_call_operand.vmem [shape: bf16[256,256], index: 3, kind: input, shape index: {}]   ;;  %s3274_s4 = inlined_call_operand.vmem [shape: f32[256,1], index: 4, kind: input, shape index: {}]   ;;  %s3275_s5 = inlined_call_operand.vmem [shape: f32[256,1], index: 5, kind: input, shape index: {}]   ;;  %s3276_s6 = inlined_call_operand.<no memory space> [shape: f32[1,1], index: 6, kind: input, shape index: {}]   ;;  %s3277_s7 = inlined_call_operand.hbm [shape: f32[1,256], index: 7, kind: output, shape index: {}]  }
   0x1   :  { %v12_v0 = vstv %s3276_s6 }
   0x2   :  { %13 = vst [vmem:[#allocation2] sm:$0x1] %v12_v0 }
   0x3   :  { %v82_v1 = vld [vmem:[%s3272_s2 + $0x20] sm:$0xff]  ;;  %v80_v2 = vld [vmem:[%s3272_s2 + $0x10] sm:$0xff]  ;;  %vm399_vm0 = vcmask 1040384   ;;  %vm400_vm1 = vcmask 1041408   ;;  %v2170_v4 = vmov 0   ;;  %v2171_v8 = vmov 65535  }
   0x4   :  { %v78_v3 = vld [vmem:[%s3272_s2] sm:$0xff]  ;;  %2143 = vset.pattern.permute.xlu2 %v2170_v4  ;;  %2142 = vset.pattern.permute.xlu1 %v2170_v4  ;;  %v39_v6 = vld [vmem:[%s3270_s0 + $0x48] sm:$0x7]  ;;  %v401_v9 = vsel %vm399_vm0, 4294967295, %v2171_v8  ;;  %v36_v13 = vld [vmem:[%s3270_s0 + $0x30] sm:$0xff] }
   0x5   :  { %v38_v5 = vld [vmem:[%s3270_s0 + $0x40] sm:$0x7]  ;;  %2141 = vset.pattern.permute.xlu0 %v2170_v4  ;;  %132 = vperm.xlu2 %2143, %v82_v1   ;;  %v45_v10 = vpack.c.bf16 %v39_v6, %v39_v6  ;;  %v402_v11 = vsel %vm400_vm1, %v401_v9, 0  ;;  %v35_v16 = vld [vmem:[%s3270_s0 + $0x28] sm:$0xff]  ;;  %v37_v17 = vld [vmem:[%s3270_s0 + $0x38] sm:$0xff] }
   0x6   :  { %v44_v7 = vpack.c.bf16 %v38_v5, %v38_v5  ;;  %122 = vperm.xlu1 %2142, %v80_v2   ;;  %112 = vperm.xlu0 %2141, %v78_v3   ;;  %v34_v12 = vld [vmem:[%s3270_s0 + $0x20] sm:$0xff]  ;;  %v43_v19 = vpack.c.bf16 %v37_v17, %v35_v16  ;;  %v32_v21 = vld [vmem:[%s3270_s0 + $0x10] sm:$0xff]  ;;  %v31_v22 = vld [vmem:[%s3270_s0 + $0x8] sm:$0xff] }
   0x7   :  { %v407_v15 = vand.u32 %v402_v11, %v45_v10  ;;  %v42_v18 = vpack.c.bf16 %v36_v13, %v34_v12  ;;  %v30_v20 = vld [vmem:[%s3270_s0] sm:$0xff]  ;;  %v33_v23 = vld [vmem:[%s3270_s0 + $0x18] sm:$0xff]  ;;  %v83_v24 = vld [vmem:[%s3272_s2 + $0x28] sm:$0xff] }
   0x8   :  { %v404_v14 = vand.u32 %v402_v11, %v44_v7  ;;  %v81_v25 = vld [vmem:[%s3272_s2 + $0x18] sm:$0xff]  ;;  %v79_v26 = vld [vmem:[%s3272_s2 + $0x8] sm:$0xff]  ;;  %v40_v27 = vpack.c.bf16 %v32_v21, %v30_v20 }
   0x9   :  { %503 = vmatpush.bf16.msra.mxu1 %v407_v15  ;;  %2127 = vmatpush.bf16.msra.mxu3 %v407_v15 }
   0xa   :  { %414 = vmatpush.bf16.msra.mxu0 %v404_v14  ;;  %2124 = vmatpush.bf16.msra.mxu2 %v404_v14 }
   0xe   :  { %415 = vmatpush.bf16.msra.mxu0 %v42_v18  ;;  %2125 = vmatpush.bf16.msra.mxu2 %v42_v18 }
   0xf   :  { %14 = vsyncpa [#allocation4], 0  ;;  %504 = vmatpush.bf16.msra.mxu1 %v43_v19  ;;  %2128 = vmatpush.bf16.msra.mxu3 %v43_v19  ;;  %v41_v28 = vpack.c.bf16 %v33_v23, %v31_v22  ;;  %v2076_v29 = vld [vmem:[%s3271_s1] sm:$0xff]  ;;  %v2085_v30 = vld [vmem:[%s3271_s1 + $0x48] sm:$0xff]  ;;  %vm350_vm2 = vcmask 285696   ;;  %s1843_s22 = sshll.u32 %s3277_s7, 4  ;;  %s1844_s22 = int_to_ptr.hbm [resolvable:$true] %s1843_s22 }
  0x10   :  { %137 = vperm.xlu2 %2143, %v83_v24   ;;  %127 = vperm.xlu1 %2142, %v81_v25   ;;  %v2274_v31 = vld [vmem:[%s3271_s1 + $0x40] sm:$0xff]  ;;  %v85_v33 = vld [vmem:[%s3272_s2 + $0x38] sm:$0xff]  ;;  %v84_v34 = vld [vmem:[%s3272_s2 + $0x30] sm:$0xff] }
  0x11   :  { %117 = vperm.xlu0 %2141, %v79_v26   ;;  %v86_v32 = vld [vmem:[%s3272_s2 + $0x40] sm:$0xff]  ;;  %v89_v35 = vld [vmem:[%s3272_s2 + $0x58] sm:$0xff]  ;;  %v88_v36 = vld [vmem:[%s3272_s2 + $0x50] sm:$0xff] }
  0x12   :  { %416 = vmatpush.bf16.msra.mxu0 %v40_v27  ;;  %2126 = vmatpush.bf16.msra.mxu2 %v40_v27  ;;  %v87_v37 = vld [vmem:[%s3272_s2 + $0x48] sm:$0xff]  ;;  %v2086_v39 = vld [vmem:[%s3271_s1 + $0x50] sm:$0xff]  ;;  %v90_v42 = vld [vmem:[%s3272_s2 + $0x60] sm:$0xff] }
  0x13   :  { %505 = vmatpush.bf16.msra.mxu1 %v41_v28  ;;  %2129 = vmatpush.bf16.msra.mxu3 %v41_v28  ;;  %v2077_v38 = vld [vmem:[%s3271_s1 + $0x8] sm:$0xff]  ;;  %v92_v40 = vld [vmem:[%s3272_s2 + $0x70] sm:$0xff]  ;;  %v94_v44 = vld [vmem:[%s3272_s2 + $0x80] sm:$0xff] }
  0x14   :  { %v91_v41 = vld [vmem:[%s3272_s2 + $0x68] sm:$0xff]  ;;  %v108_v43 = vld [vmem:[%s3272_s2 + $0xf0] sm:$0xff]  ;;  %v93_v45 = vld [vmem:[%s3272_s2 + $0x78] sm:$0xff] }
  0x15   :  { %1916 = vmatmul.msk.bf16.vlgmr.msra.gmra.mxu0 %vm350_vm2, %v2076_v29  ;;  %1925 = vmatmul.msk.bf16.vlgmr.msra.gmra.mxu2 %vm350_vm2, %v2085_v30  ;;  %v2078_v46 = vld [vmem:[%s3271_s1 + $0x10] sm:$0xff]  ;;  %v2087_v47 = vld [vmem:[%s3271_s1 + $0x58] sm:$0xff]  ;;  %v107_v48 = vld [vmem:[%s3272_s2 + $0xe8] sm:$0xff] }
  0x16   :  { %1932 = vmatmul.msk.bf16.vlgmr.msra.gmra.mxu1 %vm350_vm2, %v2076_v29  ;;  %1940 = vmatmul.msk.bf16.vlgmr.msra.gmra.mxu3 %vm350_vm2, %v2274_v31  ;;  %v106_v49 = vld [vmem:[%s3272_s2 + $0xe0] sm:$0xff]  ;;  %v109_v50 = vld [vmem:[%s3272_s2 + $0xf8] sm:$0xff]  ;;  %v104_v53 = vld [vmem:[%s3272_s2 + $0xd0] sm:$0xff] }
  0x17   :  { %v102_v51 = vld [vmem:[%s3272_s2 + $0xc0] sm:$0xff]  ;;  %v105_v52 = vld [vmem:[%s3272_s2 + $0xd8] sm:$0xff]  ;;  %v100_v57 = vld [vmem:[%s3272_s2 + $0xb0] sm:$0xff] }
  0x18   :  { %152 = vperm.xlu2 %2143, %v86_v32   ;;  %147 = vperm.xlu1 %2142, %v85_v33   ;;  %v2079_v54 = vld [vmem:[%s3271_s1 + $0x18] sm:$0xff]  ;;  %v2088_v55 = vld [vmem:[%s3271_s1 + $0x60] sm:$0xff]  ;;  %v103_v58 = vld [vmem:[%s3272_s2 + $0xc8] sm:$0xff] }
  0x19   :  { %142 = vperm.xlu0 %2141, %v84_v34   ;;  %v101_v56 = vld [vmem:[%s3272_s2 + $0xb8] sm:$0xff]  ;;  %v96_v59 = vld [vmem:[%s3272_s2 + $0x90] sm:$0xff]  ;;  %v99_v60 = vld [vmem:[%s3272_s2 + $0xa8] sm:$0xff] }
  0x1a   :  { %v98_v61 = vld [vmem:[%s3272_s2 + $0xa0] sm:$0xff]  ;;  %v2089_v63 = vld [vmem:[%s3271_s1 + $0x68] sm:$0xff]  ;;  %v97_v2 = vld [vmem:[%s3272_s2 + $0x98] sm:$0xff] }
  0x1b   :  { %v2080_v62 = vld [vmem:[%s3271_s1 + $0x20] sm:$0xff]  ;;  %v95_v1 = vld [vmem:[%s3272_s2 + $0x88] sm:$0xff]  ;;  %v718_v3 = vld [vmem:[%s3274_s4 + $0x18] sm:$0xff] }
  0x1c   :  { %v715_v0 = vld [vmem:[%s3274_s4] sm:$0xff]  ;;  %v717_v4 = vld [vmem:[%s3274_s4 + $0x10] sm:$0xff]  ;;  %v716_v5 = vld [vmem:[%s3274_s4 + $0x8] sm:$0xff] }
  0x1d   :  { %v2081_v6 = vld [vmem:[%s3271_s1 + $0x28] sm:$0xff]  ;;  %v2090_v7 = vld [vmem:[%s3271_s1 + $0x70] sm:$0xff]  ;;  %v719_v10 = vld [vmem:[%s3274_s4 + $0x20] sm:$0xff] }
  0x1e   :  { %v721_v8 = vld [vmem:[%s3274_s4 + $0x30] sm:$0xff]  ;;  %v720_v9 = vld [vmem:[%s3274_s4 + $0x28] sm:$0xff]  ;;  %v723_v12 = vld [vmem:[%s3274_s4 + $0x40] sm:$0xff] }
  0x1f   :  { %v724_v11 = vld [vmem:[%s3274_s4 + $0x48] sm:$0xff]  ;;  %v722_v13 = vld [vmem:[%s3274_s4 + $0x38] sm:$0xff]  ;;  %v2082_v14 = vld [vmem:[%s3271_s1 + $0x30] sm:$0xff] }
  0x20   :  { %167 = vperm.xlu2 %2143, %v89_v35   ;;  %162 = vperm.xlu1 %2142, %v88_v36   ;;  %v2091_v15 = vld [vmem:[%s3271_s1 + $0x78] sm:$0xff]  ;;  %v727_v16 = vld [vmem:[%s3274_s4 + $0x60] sm:$0xff]  ;;  %v725_v18 = vld [vmem:[%s3274_s4 + $0x50] sm:$0xff] }
  0x21   :  { %157 = vperm.xlu0 %2141, %v87_v37   ;;  %v726_v17 = vld [vmem:[%s3274_s4 + $0x58] sm:$0xff]  ;;  %v729_v20 = vld [vmem:[%s3274_s4 + $0x70] sm:$0xff]  ;;  %v728_v21 = vld [vmem:[%s3274_s4 + $0x68] sm:$0xff] }
  0x22   :  { %v730_v19 = vld [vmem:[%s3274_s4 + $0x78] sm:$0xff]  ;;  %v733_v23 = vld [vmem:[%s3274_s4 + $0x90] sm:$0xff]  ;;  %v732_v24 = vld [vmem:[%s3274_s4 + $0x88] sm:$0xff] }
  0x23   :  { %v2083_v22 = vld [vmem:[%s3271_s1 + $0x38] sm:$0xff]  ;;  %v731_v25 = vld [vmem:[%s3274_s4 + $0x80] sm:$0xff]  ;;  %v736_v26 = vld [vmem:[%s3274_s4 + $0xa8] sm:$0xff] }
  0x24   :  { %v735_v27 = vld [vmem:[%s3274_s4 + $0xa0] sm:$0xff]  ;;  %v734_v28 = vld [vmem:[%s3274_s4 + $0x98] sm:$0xff]  ;;  %v737_v37 = vld [vmem:[%s3274_s4 + $0xb0] sm:$0xff] }
  0x25   :  { %1917 = vmatmul.msk.bf16.gmra.mxu0 %vm350_vm2, %v2077_v38  ;;  %1926 = vmatmul.msk.bf16.gmra.mxu2 %vm350_vm2, %v2086_v39  ;;  %v739_v35 = vld [vmem:[%s3274_s4 + $0xc0] sm:$0xff]  ;;  %v738_v36 = vld [vmem:[%s3274_s4 + $0xb8] sm:$0xff] }
  0x26   :  { %1933 = vmatmul.msk.bf16.gmra.mxu1 %vm350_vm2, %v2077_v38  ;;  %1941 = vmatmul.msk.bf16.gmra.mxu3 %vm350_vm2, %v2085_v30 }
  0x28   :  { %182 = vperm.xlu2 %2143, %v92_v40   ;;  %177 = vperm.xlu1 %2142, %v91_v41  }
  0x29   :  { %172 = vperm.xlu0 %2141, %v90_v42  }
  0x30   :  { %262 = vperm.xlu2 %2143, %v108_v43   ;;  %192 = vperm.xlu1 %2142, %v94_v44  }
  0x31   :  { %187 = vperm.xlu0 %2141, %v93_v45   ;;  %v742_v45 = vld [vmem:[%s3274_s4 + $0xd8] sm:$0xff] }
  0x35   :  { %1918 = vmatmul.msk.bf16.gmra.mxu0 %vm350_vm2, %v2078_v46  ;;  %1927 = vmatmul.msk.bf16.gmra.mxu2 %vm350_vm2, %v2087_v47 }
  0x36   :  { %1934 = vmatmul.msk.bf16.gmra.mxu1 %vm350_vm2, %v2078_v46  ;;  %1942 = vmatmul.msk.bf16.gmra.mxu3 %vm350_vm2, %v2086_v39  ;;  %v741_v46 = vld [vmem:[%s3274_s4 + $0xd0] sm:$0xff] }
  0x38   :  { %257 = vperm.xlu2 %2143, %v107_v48   ;;  %252 = vperm.xlu1 %2142, %v106_v49   ;;  %v740_v49 = vld [vmem:[%s3274_s4 + $0xc8] sm:$0xff] }
  0x39   :  { %267 = vperm.xlu0 %2141, %v109_v50  }
  0x40   :  { %232 = vperm.xlu2 %2143, %v102_v51   ;;  %247 = vperm.xlu1 %2142, %v105_v52  }
  0x41   :  { %242 = vperm.xlu0 %2141, %v104_v53  }
  0x45   :  { %1919 = vmatmul.msk.bf16.gmra.mxu0 %vm350_vm2, %v2079_v54  ;;  %1928 = vmatmul.msk.bf16.gmra.mxu2 %vm350_vm2, %v2088_v55 }
  0x46   :  { %1935 = vmatmul.msk.bf16.gmra.mxu1 %vm350_vm2, %v2079_v54  ;;  %1943 = vmatmul.msk.bf16.gmra.mxu3 %vm350_vm2, %v2087_v47 }
  0x48   :  { %227 = vperm.xlu2 %2143, %v101_v56   ;;  %222 = vperm.xlu1 %2142, %v100_v57  }
  0x49   :  { %237 = vperm.xlu0 %2141, %v103_v58  }
  0x50   :  { %202 = vperm.xlu2 %2143, %v96_v59   ;;  %217 = vperm.xlu1 %2142, %v99_v60   ;;  %v745_v60 = vld [vmem:[%s3274_s4 + $0xf0] sm:$0xff] }
  0x51   :  { %212 = vperm.xlu0 %2141, %v98_v61   ;;  %v744_v61 = vld [vmem:[%s3274_s4 + $0xe8] sm:$0xff] }
  0x55   :  { %1920 = vmatmul.msk.bf16.gmra.mxu0 %vm350_vm2, %v2080_v62  ;;  %1929 = vmatmul.msk.bf16.gmra.mxu2 %vm350_vm2, %v2089_v63 }
  0x56   :  { %1936 = vmatmul.msk.bf16.gmra.mxu1 %vm350_vm2, %v2080_v62  ;;  %1944 = vmatmul.msk.bf16.gmra.mxu3 %vm350_vm2, %v2088_v55  ;;  %v743_v62 = vld [vmem:[%s3274_s4 + $0xe0] sm:$0xff] }
  0x58   :  { %749 = vperm.xlu2 %2143, %v715_v0   ;;  %197 = vperm.xlu1 %2142, %v95_v1  }
  0x59   :  { %207 = vperm.xlu0 %2141, %v97_v2  }
  0x5f   :  { %v2536_v1 = vpop.permute.xlu2 %132 }
  0x60   :  { %764 = vperm.xlu2 %2143, %v718_v3   ;;  %759 = vperm.xlu1 %2142, %v717_v4  }
  0x61   :  { %754 = vperm.xlu0 %2141, %v716_v5  }
  0x65   :  { %1921 = vmatmul.msk.bf16.gmra.mxu0 %vm350_vm2, %v2081_v6  ;;  %1930 = vmatmul.msk.bf16.gmra.mxu2 %vm350_vm2, %v2090_v7 }
  0x66   :  { %1937 = vmatmul.msk.bf16.gmra.mxu1 %vm350_vm2, %v2081_v6  ;;  %1945 = vmatmul.msk.bf16.gmra.mxu3 %vm350_vm2, %v2089_v63 }
  0x68   :  { %779 = vperm.xlu2 %2143, %v721_v8   ;;  %774 = vperm.xlu1 %2142, %v720_v9   ;;  %v1488_v8 = vld [vmem:[%s3275_s5 + $0x8] sm:$0xff]  ;;  %v1487_v9 = vld [vmem:[%s3275_s5] sm:$0xff] }
  0x69   :  { %769 = vperm.xlu0 %2141, %v719_v10  }
  0x70   :  { %794 = vperm.xlu2 %2143, %v724_v11   ;;  %789 = vperm.xlu1 %2142, %v723_v12   ;;  %v746_v12 = vld [vmem:[%s3274_s4 + $0xf8] sm:$0xff] }
  0x71   :  { %784 = vperm.xlu0 %2141, %v722_v13  }
  0x75   :  { %1922 = vmatmul.msk.bf16.gmra.mxu0 %vm350_vm2, %v2082_v14  ;;  %1931 = vmatmul.msk.bf16.gmra.mxu2 %vm350_vm2, %v2091_v15 }
  0x76   :  { %1938 = vmatmul.msk.bf16.gmra.mxu1 %vm350_vm2, %v2082_v14  ;;  %1946 = vmatmul.msk.bf16.gmra.mxu3 %vm350_vm2, %v2090_v7 }
  0x78   :  { %809 = vperm.xlu2 %2143, %v727_v16   ;;  %804 = vperm.xlu1 %2142, %v726_v17   ;;  %v113_v29 = vpop.permute.xlu0 %112  ;;  %v123_v53 = vpop.permute.xlu1 %122 }
  0x79   :  { %799 = vperm.xlu0 %2141, %v725_v18  }
  0x80   :  { %824 = vperm.xlu2 %2143, %v730_v19   ;;  %819 = vperm.xlu1 %2142, %v729_v20   ;;  %v2559_v20 = vpop.permute.xlu2 %137 }
  0x81   :  { %814 = vperm.xlu0 %2141, %v728_v21   ;;  %3294 = vst [vmem:[#allocation14_spill] sm:$0xff] %v2559_v20  ;;  %v1491_v21 = vld [vmem:[%s3275_s5 + $0x20] sm:$0xff] }
  0x82   :  { %v128_v2 = vpop.permute.xlu1 %127 }
  0x85   :  { %1923 = vmatmul.msk.bf16.gmra.mxu0 %vm350_vm2, %v2083_v22 }
  0x86   :  { %1939 = vmatmul.msk.bf16.gmra.mxu1 %vm350_vm2, %v2083_v22  ;;  %1947 = vmatmul.msk.bf16.gmra.mxu3 %vm350_vm2, %v2091_v15  ;;  %v1490_v22 = vld [vmem:[%s3275_s5 + $0x18] sm:$0xff] }
  0x88   :  { %839 = vperm.xlu2 %2143, %v733_v23   ;;  %834 = vperm.xlu1 %2142, %v732_v24   ;;  %v1489_v23 = vld [vmem:[%s3275_s5 + $0x10] sm:$0xff] }
  0x89   :  { %829 = vperm.xlu0 %2141, %v731_v25  }
  0x90   :  { %854 = vperm.xlu2 %2143, %v736_v26   ;;  %849 = vperm.xlu1 %2142, %v735_v27  }
  0x91   :  { %844 = vperm.xlu0 %2141, %v734_v28  }
  0x92   :  { %v418_v30 = vpop.f32.mrf.mxu0 }
  0x93   :  { %v419_v32 = vadd.f32 %v418_v30, %v113_v29  ;;  %v507_v33 = vpop.f32.mrf.mxu1  ;;  %v1493_v30 = vld [vmem:[%s3275_s5 + $0x30] sm:$0xff] }
  0x94   :  { %v508_v34 = vadd.f32 %v507_v33, %v113_v29  ;;  %v1494_v29 = vld [vmem:[%s3275_s5 + $0x38] sm:$0xff]  ;;  %v2587_v33 = vpop.permute.xlu2 %152 }
  0x95   :  { %1924 = vmatmul.msk.bf16.gmra.mxu0 %vm350_vm2, %v2274_v31  ;;  %v118_v31 = vpop.permute.xlu0 %117  ;;  %v587_v47 = vmax.f32 %v419_v32, 0.0  ;;  %v1492_v32 = vld [vmem:[%s3275_s5 + $0x28] sm:$0xff] }
  0x96   :  { %v588_v43 = vmax.f32 %v508_v34, 0.0  ;;  %v2589_v34 = vpop.permute.xlu1 %147 }
  0x98   :  { %869 = vperm.xlu2 %2143, %v739_v35   ;;  %864 = vperm.xlu1 %2142, %v738_v36   ;;  %v2502_v38 = vpop.f32.mrf.mxu2 }
  0x99   :  { %859 = vperm.xlu0 %2141, %v737_v37   ;;  %v2504_v39 = vpop.f32.mrf.mxu3 }
  0x9a   :  { %3286 = vst [vmem:[#allocation6_spill] sm:$0xff] %v2504_v39  ;;  %v420_v40 = vpop.f32.mrf.mxu0 }
  0x9b   :  { %v421_v41 = vadd.f32 %v420_v40, %v118_v31  ;;  %v509_v42 = vpop.f32.mrf.mxu1 }
  0x9c   :  { %v510_v44 = vadd.f32 %v509_v42, %v118_v31 }
  0x9d   :  { %v589_v48 = vmax.f32 %v421_v41, 0.0  ;;  %v143_v26 = vpop.permute.xlu0 %142 }
  0x9e   :  { %v590_v50 = vmax.f32 %v510_v44, 0.0  ;;  %v1496_v44 = vld [vmem:[%s3275_s5 + $0x48] sm:$0xff] }
  0x9f   :  { %v2517_v52 = vpack.c.bf16 %v589_v48, %v587_v47  ;;  %v2610_v47 = vpop.permute.xlu2 %167 }
  0xa0   :  { %884 = vperm.xlu2 %2143, %v742_v45   ;;  %879 = vperm.xlu1 %2142, %v741_v46   ;;  %v2515_v51 = vpop.f32.mrf.mxu2  ;;  %v2521_v55 = vpack.c.bf16 %v590_v50, %v588_v43  ;;  %v1497_v43 = vld [vmem:[%s3275_s5 + $0x50] sm:$0xff]  ;;  %v1495_v45 = vld [vmem:[%s3275_s5 + $0x40] sm:$0xff] }
  0xa1   :  { %3287 = vst [vmem:[#allocation7_spill] sm:$0xff] %v2517_v52  ;;  %874 = vperm.xlu0 %2141, %v740_v49   ;;  %v2519_v54 = vpop.f32.mrf.mxu3  ;;  %v2614_v49 = vpop.permute.xlu1 %162 }
  0xa2   :  { %3288 = vst [vmem:[#allocation8_spill] sm:$0xff] %v2519_v54  ;;  %v423_v56 = vpop.f32.mrf.mxu0 }
  0xa3   :  { %3289 = vst [vmem:[#allocation9_spill] sm:$0xff] %v2521_v55  ;;  %v424_v57 = vadd.f32 %v423_v56, %v123_v53  ;;  %v512_v58 = vpop.f32.mrf.mxu1 }
  0xa4   :  { %v513_v59 = vadd.f32 %v512_v58, %v123_v53  ;;  %v1500_v58 = vld [vmem:[%s3275_s5 + $0x68] sm:$0xff] }
  0xa5   :  { %v591_v10 = vmax.f32 %v424_v57, 0.0  ;;  %v2595_v31 = vpop.permute.xlu0 %157 }
  0xa6   :  { %v592_v6 = vmax.f32 %v513_v59, 0.0  ;;  %v1499_v59 = vld [vmem:[%s3275_s5 + $0x60] sm:$0xff] }
  0xa8   :  { %899 = vperm.xlu2 %2143, %v745_v60   ;;  %894 = vperm.xlu1 %2142, %v744_v61   ;;  %v2532_v63 = vpop.f32.mrf.mxu2  ;;  %v1498_v61 = vld [vmem:[%s3275_s5 + $0x58] sm:$0xff] }
  0xa9   :  { %889 = vperm.xlu0 %2141, %v743_v62   ;;  %v2534_v0 = vpop.f32.mrf.mxu3 }
  0xaa   :  { %3290 = vst [vmem:[#allocation10_spill] sm:$0xff] %v2534_v0  ;;  %v425_v3 = vpop.f32.mrf.mxu0 }
  0xab   :  { %v426_v4 = vadd.f32 %v425_v3, %v128_v2  ;;  %v514_v5 = vpop.f32.mrf.mxu1 }
  0xac   :  { %v515_v7 = vadd.f32 %v514_v5, %v128_v2  ;;  %v2636_v5 = vpop.permute.xlu2 %182 }
  0xad   :  { %v593_v11 = vmax.f32 %v426_v4, 0.0  ;;  %v2625_v60 = vpop.permute.xlu0 %172 }
  0xae   :  { %v594_v13 = vmax.f32 %v515_v7, 0.0  ;;  %v2640_v7 = vpop.permute.xlu1 %177 }
  0xaf   :  { %v2549_v15 = vpack.c.bf16 %v593_v11, %v591_v10  ;;  %v1502_v10 = vld [vmem:[%s3275_s5 + $0x78] sm:$0xff]  ;;  %v1501_v11 = vld [vmem:[%s3275_s5 + $0x70] sm:$0xff] }
  0xb0   :  { %1526 = vperm.xlu2 %2143, %v1488_v8   ;;  %1521 = vperm.xlu1 %2142, %v1487_v9   ;;  %v2547_v14 = vpop.f32.mrf.mxu2  ;;  %v2553_v17 = vpack.c.bf16 %v594_v13, %v592_v6  ;;  %v1503_v9 = vld [vmem:[%s3275_s5 + $0x80] sm:$0xff] }
  0xb1   :  { %3291 = vst [vmem:[#allocation11_spill] sm:$0xff] %v2549_v15  ;;  %904 = vperm.xlu0 %2141, %v746_v12   ;;  %v2551_v16 = vpop.f32.mrf.mxu3 }
  0xb2   :  { %3292 = vst [vmem:[#allocation12_spill] sm:$0xff] %v2551_v16  ;;  %v2555_v18 = vpop.f32.mrf.mxu0 }
  0xb3   :  { %3293 = vst [vmem:[#allocation13_spill] sm:$0xff] %v2553_v17  ;;  %v2557_v19 = vpop.f32.mrf.mxu1  ;;  %v1515_v17 = vld [vmem:[%s3275_s5 + $0xe0] sm:$0xff] }
  0xb5   :  { %v2653_v12 = vpop.permute.xlu0 %187 }
  0xb8   :  { %1541 = vperm.xlu2 %2143, %v1491_v21   ;;  %1536 = vperm.xlu1 %2142, %v1490_v22   ;;  %v2570_v24 = vpop.f32.mrf.mxu2 }
  0xb9   :  { %1531 = vperm.xlu0 %2141, %v1489_v23   ;;  %v2572_v25 = vpop.f32.mrf.mxu3 }
  0xba   :  { %3295 = vst [vmem:[#allocation15_spill] sm:$0xff] %v2572_v25  ;;  %v2574_v27 = vpop.f32.mrf.mxu0 }
  0xbb   :  { %3296 = vst [vmem:[#allocation16_spill] sm:$0xff] %v2574_v27  ;;  %v2576_v28 = vpop.f32.mrf.mxu1 }
  0xbc   :  { %3297 = vst [vmem:[#allocation17_spill] sm:$0xff] %v2576_v28 }
  0xc0   :  { %1556 = vperm.xlu2 %2143, %v1494_v29   ;;  %1551 = vperm.xlu1 %2142, %v1493_v30   ;;  %v2591_v35 = vpop.f32.mrf.mxu2  ;;  %v1506_v29 = vld [vmem:[%s3275_s5 + $0x98] sm:$0xff]  ;;  %v1505_v30 = vld [vmem:[%s3275_s5 + $0x90] sm:$0xff] }
  0xc1   :  { %1546 = vperm.xlu0 %2141, %v1492_v32   ;;  %v2593_v36 = vpop.f32.mrf.mxu3  ;;  %v2671_v32 = vpop.permute.xlu1 %192 }
  0xc2   :  { %3298 = vst [vmem:[#allocation18_spill] sm:$0xff] %v2593_v36  ;;  %v433_v37 = vpop.f32.mrf.mxu0  ;;  %v1518_v36 = vld [vmem:[%s3275_s5 + $0xf8] sm:$0xff] }
  0xc3   :  { %v2597_v40 = vadd.f32 %v433_v37, %v143_v26  ;;  %v522_v41 = vpop.f32.mrf.mxu1  ;;  %3305 = vst [vmem:[#allocation25_spill] sm:$0xff] %v2671_v32  ;;  %v1504_v37 = vld [vmem:[%s3275_s5 + $0x88] sm:$0xff] }
  0xc4   :  { %v523_v42 = vadd.f32 %v522_v41, %v143_v26  ;;  %v2663_v26 = vpop.permute.xlu2 %262 }
  0xc5   :  { %3299 = vst [vmem:[#allocation19_spill] sm:$0xff] %v2597_v40 }
  0xc6   :  { %v600_v56 = vmax.f32 %v523_v42, 0.0 }
  0xc8   :  { %1571 = vperm.xlu2 %2143, %v1497_v43   ;;  %1566 = vperm.xlu1 %2142, %v1496_v44   ;;  %v2608_v46 = vpop.f32.mrf.mxu2  ;;  %v2680_v43 = vpop.permute.xlu0 %267 }
  0xc9   :  { %1561 = vperm.xlu0 %2141, %v1495_v45   ;;  %v2612_v48 = vpop.f32.mrf.mxu3 }
  0xca   :  { %3300 = vst [vmem:[#allocation20_spill] sm:$0xff] %v2612_v48  ;;  %v2616_v50 = vpop.f32.mrf.mxu0 }
  0xcb   :  { %3301 = vst [vmem:[#allocation21_spill] sm:$0xff] %v2616_v50  ;;  %v524_v53 = vpop.f32.mrf.mxu1 }
  0xcc   :  { %v525_v57 = vadd.f32 %v524_v53, %v2589_v34  ;;  %v1509_v53 = vld [vmem:[%s3275_s5 + $0xb0] sm:$0xff] }
  0xce   :  { %v602_v62 = vmax.f32 %v525_v57, 0.0  ;;  %v1507_v57 = vld [vmem:[%s3275_s5 + $0xa0] sm:$0xff] }
  0xd0   :  { %1586 = vperm.xlu2 %2143, %v1500_v58   ;;  %1581 = vperm.xlu1 %2142, %v1499_v59   ;;  %v2630_v2 = vpop.f32.mrf.mxu2  ;;  %v2634_v4 = vpack.c.bf16 %v602_v62, %v600_v56  ;;  %v1508_v56 = vld [vmem:[%s3275_s5 + $0xa8] sm:$0xff]  ;;  %v2695_v58 = vpop.permute.xlu2 %257 }
  0xd1   :  { %1576 = vperm.xlu0 %2141, %v1498_v61   ;;  %v2632_v3 = vpop.f32.mrf.mxu3  ;;  %v2697_v59 = vpop.permute.xlu1 %252 }
  0xd2   :  { %3302 = vst [vmem:[#allocation22_spill] sm:$0xff] %v2632_v3  ;;  %v2638_v6 = vpop.f32.mrf.mxu0  ;;  %v1517_v3 = vld [vmem:[%s3275_s5 + $0xf0] sm:$0xff] }
  0xd3   :  { %3303 = vst [vmem:[#allocation23_spill] sm:$0xff] %v2634_v4  ;;  %v2642_v8 = vpop.f32.mrf.mxu1 }
  0xd8   :  { %1601 = vperm.xlu2 %2143, %v1503_v9   ;;  %1596 = vperm.xlu1 %2142, %v1502_v10   ;;  %v2655_v13 = vpop.f32.mrf.mxu2  ;;  %v2703_v10 = vpop.permute.xlu0 %242 }
  0xd9   :  { %1591 = vperm.xlu0 %2141, %v1501_v11   ;;  %v2657_v21 = vpop.f32.mrf.mxu3  ;;  %v2720_v55 = vpop.permute.xlu1 %247 }
  0xda   :  { %3304 = vst [vmem:[#allocation24_spill] sm:$0xff] %v2657_v21  ;;  %v2659_v22 = vpop.f32.mrf.mxu0 }
  0xdb   :  { %v2661_v23 = vpop.f32.mrf.mxu1 }
  0xe0   :  { %1616 = vperm.xlu2 %2143, %v1506_v29   ;;  %1611 = vperm.xlu1 %2142, %v1505_v30   ;;  %v2676_v41 = vpop.f32.mrf.mxu2  ;;  %v1512_v29 = vld [vmem:[%s3275_s5 + $0xc8] sm:$0xff]  ;;  %v1511_v30 = vld [vmem:[%s3275_s5 + $0xc0] sm:$0xff] }
  0xe1   :  { %1606 = vperm.xlu0 %2141, %v1504_v37   ;;  %v2678_v42 = vpop.f32.mrf.mxu3  ;;  %v1510_v37 = vld [vmem:[%s3275_s5 + $0xb8] sm:$0xff]  ;;  %v2741_v4 = vpop.permute.xlu1 %222 }
  0xe2   :  { %3306 = vst [vmem:[#allocation26_spill] sm:$0xff] %v2678_v42  ;;  %v2682_v44 = vpop.f32.mrf.mxu0  ;;  %v474_v27 = vadd.f32 %v2570_v24, %v2741_v4 }
  0xe3   :  { %v2684_v45 = vpop.f32.mrf.mxu1 }
  0xe8   :  { %1631 = vperm.xlu2 %2143, %v1509_v53   ;;  %1626 = vperm.xlu1 %2142, %v1508_v56   ;;  %v488_v61 = vpop.f32.mrf.mxu2  ;;  %v2716_v56 = vpop.permute.xlu2 %232 }
  0xe9   :  { %1621 = vperm.xlu0 %2141, %v1507_v57   ;;  %v2699_v62 = vpop.f32.mrf.mxu3 }
  0xea   :  { %3307 = vst [vmem:[#allocation27_spill] sm:$0xff] %v2699_v62  ;;  %v2701_v9 = vpop.f32.mrf.mxu0 }
  0xeb   :  { %v2705_v11 = vpop.f32.mrf.mxu1 }
  0xf0   :  { %1646 = vperm.xlu2 %2143, %v1512_v29   ;;  %1641 = vperm.xlu1 %2142, %v1511_v30   ;;  %v490_v53 = vpop.f32.mrf.mxu2  ;;  %v1514_v29 = vld [vmem:[%s3275_s5 + $0xd8] sm:$0xff]  ;;  %v2732_v30 = vpop.permute.xlu0 %237 }
  0xf1   :  { %1636 = vperm.xlu0 %2141, %v1510_v37   ;;  %v2718_v57 = vpop.f32.mrf.mxu3  ;;  %v1513_v37 = vld [vmem:[%s3275_s5 + $0xd0] sm:$0xff]  ;;  %v2739_v0 = vpop.permute.xlu2 %227  ;;  %v491_v32 = vadd.f32 %v490_v53, %v2695_v58  ;;  %v484_v53 = vadd.f32 %v2655_v13, %v2703_v10 }
  0xf2   :  { %v2722_v52 = vpop.f32.mrf.mxu0  ;;  %3308 = vst [vmem:[#allocation28_spill] sm:$0xff] %v2739_v0  ;;  %v476_v20 = vadd.f32 %v2591_v35, %v2739_v0  ;;  %v631_v35 = vmax.f32 %v474_v27, 0.0 }
  0xf3   :  { %v2724_v39 = vpop.f32.mrf.mxu1  ;;  %v639_v27 = vmax.f32 %v484_v53, 0.0 }
  0xf8   :  { %1661 = vperm.xlu2 %2143, %v1515_v17   ;;  %1656 = vperm.xlu1 %2142, %v1514_v29   ;;  %v493_v15 = vpop.f32.mrf.mxu2  ;;  %v1516_v17 = vld [vmem:[%s3275_s5 + $0xe8] sm:$0xff] }
  0xf9   :  { %1651 = vperm.xlu0 %2141, %v1513_v37   ;;  %v2737_v54 = vpop.f32.mrf.mxu3  ;;  %v494_v29 = vadd.f32 %v493_v15, %v2663_v26  ;;  %v2753_v37 = vpop.permute.xlu0 %212  ;;  %v489_v15 = vadd.f32 %v488_v61, %v2697_v59 }
  0xfa   :  { %v450_v16 = vpop.f32.mrf.mxu0  ;;  %3309 = vst [vmem:[#allocation29_spill] sm:$0xff] %v2753_v37  ;;  %v2764_v62 = vpop.permute.xlu2 %202  ;;  %v2782_v13 = vadd.f32 %v2532_v63, %v2753_v37 }
  0xfb   :  { %v539_v25 = vpop.f32.mrf.mxu1  ;;  %v647_v42 = vmax.f32 %v494_v29, 0.0  ;;  %3310 = vst [vmem:[#allocation30_spill] sm:$0xff] %v2764_v62  ;;  %v2772_v24 = vadd.f32 %v2502_v38, %v2764_v62  ;;  %v2774_v61 = vpop.permute.xlu1 %217  ;;  %v633_v29 = vmax.f32 %v476_v20, 0.0  ;;  %v481_v38 = vadd.f32 %v2630_v2, %v2732_v30 }
  0xfc   :  { %v2778_v0 = vadd.f32 %v2547_v14, %v2774_v61  ;;  %v2791_v62 = vadd.f32 %v2555_v18, %v2536_v1 }
 0x100   :  { %1676 = vperm.xlu2 %2143, %v1518_v36   ;;  %1671 = vperm.xlu1 %2142, %v1517_v3   ;;  %v495_v48 = vpop.f32.mrf.mxu2 }
 0x101   :  { %1666 = vperm.xlu0 %2141, %v1516_v17   ;;  %v496_v40 = vadd.f32 %v495_v48, %v2680_v43  ;;  %v2757_v28 = vpop.f32.mrf.mxu3  ;;  %v486_v48 = vadd.f32 %v2676_v41, %v2720_v55  ;;  %v645_v17 = vmax.f32 %v491_v32, 0.0  ;;  %v643_v41 = vmax.f32 %v489_v15, 0.0  ;;  %v2793_v63 = vpop.permute.xlu0 %207 }
 0x102   :  { %v453_v36 = vpop.f32.mrf.mxu0  ;;  %v627_v15 = vmax.f32 %v2782_v13, 0.0  ;;  %v2803_v37 = vadd.f32 %v2515_v51, %v2793_v63  ;;  %v538_v51 = vadd.f32 %v2724_v39, %v2625_v60  ;;  %v444_v39 = vadd.f32 %v2682_v44, %v2614_v49 }
 0x103   :  { %v649_v21 = vmax.f32 %v496_v40, 0.0  ;;  %v542_v3 = vpop.f32.mrf.mxu1  ;;  %v1817_v40 = vld [vmem:[#allocation2] sm:$0x1]  ;;  %v641_v32 = vmax.f32 %v486_v48, 0.0  ;;  %v705_v48 = vpack.c.bf16 %v633_v29, %v631_v35  ;;  %v446_v29 = vadd.f32 %v2701_v9, %v2610_v47 }
 0x104   :  { %v543_v2 = vadd.f32 %v542_v3, %v2636_v5  ;;  %v449_v3 = vadd.f32 %v2722_v52, %v2625_v60  ;;  %v535_v52 = vadd.f32 %v2705_v11, %v2610_v47  ;;  %v441_v47 = vadd.f32 %v2659_v22, %v2595_v31 }
 0x105   :  { %v713_v50 = vpack.c.bf16 %v649_v21, %v647_v42  ;;  %v479_v21 = vadd.f32 %v2608_v46, %v2716_v56  ;;  %v711_v42 = vpack.c.bf16 %v645_v17, %v643_v41  ;;  %v451_v41 = vadd.f32 %v450_v16, %v2640_v7 }
 0x106   :  { %v709_v46 = vpack.c.bf16 %v641_v32, %v639_v27  ;;  %v533_v27 = vadd.f32 %v2684_v45, %v2614_v49  ;;  %v611_v60 = vmax.f32 %v449_v3, 0.0  ;;  %v528_v45 = vadd.f32 %v2642_v8, %v2587_v33 }
 0x107   :  { %1156 = vmatpush.bf16.msrb.mxu3 %v713_v50  ;;  %v454_v50 = vadd.f32 %v453_v36, %v2636_v5  ;;  %v635_v17 = vmax.f32 %v479_v21, 0.0  ;;  %v540_v36 = vadd.f32 %v539_v25, %v2640_v7  ;;  %v2809_v5 = vadd.f32 %v2638_v6, %v2587_v33 }
 0x108   :  { %v616_v21 = vmax.f32 %v543_v2, 0.0  ;;  %v613_v7 = vmax.f32 %v451_v41, 0.0  ;;  %v609_v11 = vmax.f32 %v446_v29, 0.0  ;;  %v578_v49 = vadd.f32 %v2737_v54, %v2697_v59  ;;  %v3316_v29 = vld [vmem:[#allocation14_spill] sm:$0xff] }
 0x109   :  { %1820 = vperm.xlu0 %2141, %v1817_v40   ;;  %v582_v20 = vpop.f32.mrf.mxu3  ;;  %v637_v40 = vmax.f32 %v481_v38, 0.0  ;;  %v615_v16 = vmax.f32 %v454_v50, 0.0  ;;  %v614_v32 = vmax.f32 %v540_v36, 0.0  ;;  %v610_v33 = vmax.f32 %v535_v52, 0.0 }
 0x10a   :  { %v455_v53 = vpop.f32.mrf.mxu0  ;;  %v607_v22 = vmax.f32 %v444_v39, 0.0  ;;  %v575_v2 = vadd.f32 %v2718_v57, %v2720_v55  ;;  %v2844_v54 = vadd.f32 %v2557_v19, %v2536_v1  ;;  %v625_v59 = vmax.f32 %v2803_v37, 0.0  ;;  %v3313_v55 = vld [vmem:[#allocation27_spill] sm:$0xff] }
 0x10b   :  { %1157 = vmatpush.bf16.msrb.mxu3 %v711_v42  ;;  %v456_v18 = vadd.f32 %v455_v53, %v2653_v12  ;;  %v544_v14 = vpop.f32.mrf.mxu1  ;;  %v707_v6 = vpack.c.bf16 %v637_v40, %v635_v17  ;;  %v3311_v40 = vld [vmem:[#allocation21_spill] sm:$0xff]  ;;  %v573_v57 = vadd.f32 %v3313_v55, %v2703_v10  ;;  %v644_v36 = vmax.f32 %v578_v49, 0.0  ;;  %v3317_v10 = vld [vmem:[#allocation16_spill] sm:$0xff] }
 0x10c   :  { %v545_v13 = vadd.f32 %v544_v14, %v2653_v12  ;;  %v583_v12 = vadd.f32 %v582_v20, %v2663_v26  ;;  %v580_v14 = vadd.f32 %v2757_v28, %v2695_v58  ;;  %v612_v20 = vmax.f32 %v538_v51, 0.0 }
 0x10d   :  { %v617_v35 = vmax.f32 %v456_v18, 0.0  ;;  %v695_v58 = vpack.c.bf16 %v613_v7, %v611_v60  ;;  %v605_v18 = vmax.f32 %v441_v47, 0.0  ;;  %v603_v1 = vmax.f32 %v2809_v5, 0.0  ;;  %v3319_v5 = vld [vmem:[#allocation19_spill] sm:$0xff]  ;;  %v3322_v60 = vld [vmem:[#allocation28_spill] sm:$0xff] }
 0x10e   :  { %v618_v25 = vmax.f32 %v545_v13, 0.0  ;;  %v648_v44 = vmax.f32 %v583_v12, 0.0  ;;  %v2838_v8 = vpack.c.bf16 %v614_v32, %v612_v20  ;;  %v646_v53 = vmax.f32 %v580_v14, 0.0  ;;  %v198_v12 = vpop.permute.xlu1 %197  ;;  %v3323_v14 = vld [vmem:[#allocation22_spill] sm:$0xff] }
 0x10f   :  { %1158 = vmatpush.bf16.msrb.mxu3 %v709_v46  ;;  %v697_v38 = vpack.c.bf16 %v617_v35, %v615_v16  ;;  %v608_v46 = vmax.f32 %v533_v27, 0.0  ;;  %v693_v13 = vpack.c.bf16 %v609_v11, %v607_v22  ;;  %v604_v19 = vmax.f32 %v528_v45, 0.0 }
 0x110   :  { %v2822_v9 = vpack.c.bf16 %v618_v25, %v616_v21  ;;  %v712_v35 = vpack.c.bf16 %v646_v53, %v644_v36  ;;  %v431_v51 = vadd.f32 %v3317_v10, %v3316_v29  ;;  %v3318_v21 = vld [vmem:[#allocation17_spill] sm:$0xff]  ;;  %v599_v7 = vmax.f32 %v3319_v5, 0.0 }
 0x111   :  { %v584_v42 = vpop.f32.mrf.mxu3  ;;  %1067 = vmatpush.bf16.msrb.mxu2 %v697_v38  ;;  %v2855_v3 = vpack.c.bf16 %v610_v33, %v608_v46  ;;  %v520_v25 = vadd.f32 %v3318_v21, %v3316_v29  ;;  %v3320_v38 = vld [vmem:[#allocation25_spill] sm:$0xff]  ;;  %v691_v32 = vpack.c.bf16 %v605_v18, %v603_v1  ;;  %v3324_v47 = vmax.f32 %v2772_v24, 0.0  ;;  %v3329_v1 = vld [vmem:[#allocation12_spill] sm:$0xff]  ;;  %v3335_v21 = vld [vmem:[#allocation6_spill] sm:$0xff] }
 0x112   :  { %v585_v26 = vadd.f32 %v584_v42, %v2680_v43  ;;  %1245 = vmatpush.bf16.msrb.mxu0 %v2822_v9  ;;  %v458_v50 = vpop.f32.mrf.mxu0  ;;  %v530_v43 = vadd.f32 %v2661_v23, %v2595_v31  ;;  %v436_v31 = vadd.f32 %v3311_v40, %v2589_v34  ;;  %v3312_v23 = vmax.f32 %v2778_v0, 0.0  ;;  %v3314_v34 = vld [vmem:[#allocation24_spill] sm:$0xff]  ;;  %v1950_v10 = vld [vmem:[%s3273_s3] sm:$0xf] }
 0x113   :  { %1159 = vmatpush.bf16.msrb.mxu3 %v707_v6  ;;  %v568_v16 = vadd.f32 %v3314_v34, %v2716_v56  ;;  %v459_v6 = vadd.f32 %v458_v50, %v3320_v38  ;;  %v3321_v42 = vld [vmem:[#allocation20_spill] sm:$0xff]  ;;  %v701_v11 = vpack.c.bf16 %v625_v59, %v3324_v47  ;;  %v595_v24 = vmax.f32 %v2791_v62, 0.0  ;;  %v3327_v59 = vld [vmem:[#allocation15_spill] sm:$0xff]  ;;  %v3331_v34 = vld [vmem:[#allocation10_spill] sm:$0xff] }
 0x114   :  { %v650_v28 = vmax.f32 %v585_v26, 0.0  ;;  %v703_v41 = vpack.c.bf16 %v3312_v23, %v627_v15  ;;  %v606_v37 = vmax.f32 %v530_v43, 0.0  ;;  %v642_v15 = vmax.f32 %v575_v2, 0.0  ;;  %v3325_v2 = vld [vmem:[#allocation18_spill] sm:$0xff] }
 0x115   :  { %1068 = vmatpush.bf16.msrb.mxu2 %v695_v58  ;;  %v601_v27 = vmax.f32 %v436_v31, 0.0  ;;  %v563_v39 = vadd.f32 %v3321_v42, %v2741_v4  ;;  %v565_v26 = vadd.f32 %v3323_v14, %v3322_v60  ;;  %v636_v20 = vmax.f32 %v568_v16, 0.0  ;;  %v2092_v4 = vld [vmem:[%s3273_s3 + $0x4] sm:$0xf]  ;;  %v1952_v58 = vld [vmem:[%s3273_s3 + $0x8] sm:$0xf0] }
 0x116   :  { %v714_v17 = vpack.c.bf16 %v650_v28, %v648_v44  ;;  %1246 = vmatpush.bf16.msrb.mxu0 %v2838_v8  ;;  %v2872_v45 = vpack.c.bf16 %v606_v37, %v604_v19  ;;  %v619_v28 = vmax.f32 %v459_v6, 0.0  ;;  %v596_v43 = vmax.f32 %v2844_v54, 0.0  ;;  %v3330_v37 = vld [vmem:[#allocation30_spill] sm:$0xff]  ;;  %v3336_v6 = vld [vmem:[#allocation7_spill] sm:$0xff] }
 0x117   :  { %1160 = vmatpush.bf16.msrb.mxu3 %v705_v48  ;;  %v3315_v48 = vld [vmem:[#allocation26_spill] sm:$0xff]  ;;  %v597_v46 = vmax.f32 %v431_v51, 0.0  ;;  %v689_v33 = vpack.c.bf16 %v601_v27, %v599_v7  ;;  %v598_v22 = vmax.f32 %v520_v25, 0.0  ;;  %v560_v53 = vadd.f32 %v3325_v2, %v2774_v61  ;;  %v3334_v51 = vld [vmem:[#allocation13_spill] sm:$0xff] }
 0x118   :  { %1334 = vmatpush.bf16.msrb.mxu1 %v714_v17  ;;  %v570_v0 = vadd.f32 %v3315_v48, %v2732_v30  ;;  %v640_v30 = vmax.f32 %v573_v57, 0.0  ;;  %v3326_v17 = vld [vmem:[#allocation29_spill] sm:$0xff]  ;;  %v632_v23 = vmax.f32 %v563_v39, 0.0  ;;  %v1955_v55 = vor.u32 %v2092_v4, %v1952_v58  ;;  %v3328_v57 = vld [vmem:[#allocation23_spill] sm:$0xff]  ;;  %v3332_v48 = vld [vmem:[#allocation8_spill] sm:$0xff] }
 0x119   :  { %1069 = vmatpush.bf16.msrb.mxu2 %v693_v13  ;;  %v558_v40 = vadd.f32 %v3327_v59, %v3326_v17  ;;  %v687_v62 = vpack.c.bf16 %v597_v46, %v595_v24  ;;  %v688_v54 = vpack.c.bf16 %v598_v22, %v596_v43  ;;  %v630_v36 = vmax.f32 %v560_v53, 0.0  ;;  %v3337_v27 = vld [vmem:[#allocation9_spill] sm:$0xff]  ;;  %v2956_v24 = vpop.permute.xlu1 %759  ;;  %v2100_v46 = vld [vmem:[%s3273_s3 + $0x44] sm:$0xf] }
 0x11a   :  { %1247 = vmatpush.bf16.msrb.mxu0 %v2855_v3  ;;  %v460_v56 = vpop.f32.mrf.mxu0  ;;  %v638_v50 = vmax.f32 %v570_v0, 0.0  ;;  %v710_v44 = vpack.c.bf16 %v642_v15, %v640_v30  ;;  %v555_v61 = vadd.f32 %v3329_v1, %v2793_v63  ;;  %v553_v16 = vadd.f32 %v3331_v34, %v3330_v37  ;;  %v2093_v63 = vld [vmem:[%s3273_s3 + $0x4] sm:$0xf0]  ;;  %v2094_v30 = vld [vmem:[%s3273_s3 + $0x14] sm:$0xf] }
 0x11b   :  { %1161 = vmatpush.bf16.msrb.mxu3 %v703_v41  ;;  %v461_v52 = vadd.f32 %v460_v56, %v198_v12  ;;  %v634_v41 = vmax.f32 %v565_v26, 0.0  ;;  %v628_v13 = vmax.f32 %v558_v40, 0.0  ;;  %v550_v0 = vadd.f32 %v3332_v48, %v198_v12  ;;  %v2095_v39 = vld [vmem:[%s3273_s3 + $0x14] sm:$0xf0]  ;;  %v1966_v26 = vld [vmem:[%s3273_s3 + $0x20] sm:$0xf] }
 0x11c   :  { %1335 = vmatpush.bf16.msrb.mxu1 %v712_v35  ;;  %v708_v18 = vpack.c.bf16 %v638_v50, %v636_v20  ;;  %v626_v15 = vmax.f32 %v555_v61, 0.0  ;;  %v3333_v35 = vld [vmem:[#allocation11_spill] sm:$0xff]  ;;  %v548_v25 = vadd.f32 %v3335_v21, %v3320_v38  ;;  %v624_v5 = vmax.f32 %v553_v16, 0.0  ;;  %v1976_v20 = vld [vmem:[%s3273_s3 + $0x38] sm:$0xf0]  ;;  %v2944_v50 = vpop.permute.xlu2 %749 }
 0x11d   :  { %v621_v49 = vmax.f32 %v461_v52, 0.0  ;;  %1070 = vmatpush.bf16.msrb.mxu2 %v691_v32  ;;  %v706_v19 = vpack.c.bf16 %v634_v41, %v632_v23  ;;  %v704_v29 = vpack.c.bf16 %v630_v36, %v628_v13  ;;  %v1951_v7 = vor.u32 %v2093_v63, %v1950_v10  ;;  %v1960_v52 = vld [vmem:[%s3273_s3 + $0x18] sm:$0xf0]  ;;  %v2099_v4 = vld [vmem:[%s3273_s3 + $0x34] sm:$0xf0] }
 0x11e   :  { %1248 = vmatpush.bf16.msrb.mxu0 %v2872_v45  ;;  %v622_v12 = vmax.f32 %v550_v0, 0.0  ;;  %v702_v56 = vpack.c.bf16 %v626_v15, %v624_v5  ;;  %v620_v38 = vmax.f32 %v548_v25, 0.0  ;;  %v1963_v42 = vor.u32 %v2094_v30, %v1960_v52  ;;  %v1982_v59 = vld [vmem:[%s3273_s3 + $0x40] sm:$0xf]  ;;  %v2101_v40 = vld [vmem:[%s3273_s3 + $0x44] sm:$0xf0] }
 0x11f   :  { %1162 = vmatpush.bf16.msrb.mxu3 %v701_v11  ;;  %v699_v31 = vpack.c.bf16 %v621_v49, %v619_v28  ;;  %v2098_v11 = vld [vmem:[%s3273_s3 + $0x34] sm:$0xf]  ;;  %v1974_v28 = vld [vmem:[%s3273_s3 + $0x30] sm:$0xf]  ;;  %v1983_v23 = vor.u32 %v2101_v40, %v1982_v59  ;;  %v2103_v61 = vld [vmem:[%s3273_s3 + $0x54] sm:$0xf0] }
 0x120   :  { %1336 = vmatpush.bf16.msrb.mxu1 %v710_v44  ;;  %v700_v32 = vpack.c.bf16 %v622_v12, %v620_v38  ;;  %v1979_v49 = vor.u32 %v2098_v11, %v1976_v20  ;;  %v2946_v44 = vpop.permute.xlu0 %754  ;;  %v1975_v43 = vor.u32 %v2099_v4, %v1974_v28  ;;  %v2102_v41 = vld [vmem:[%s3273_s3 + $0x54] sm:$0xf]  ;;  %v1990_v1 = vld [vmem:[%s3273_s3 + $0x50] sm:$0xf]  ;;  %v2104_v37 = vld [vmem:[%s3273_s3 + $0x64] sm:$0xf] }
 0x121   :  { %1071 = vmatpush.bf16.msrb.mxu2 %v689_v33  ;;  %v1984_v33 = vld [vmem:[%s3273_s3 + $0x48] sm:$0xf0]  ;;  %v2968_v17 = vpop.permute.xlu1 %774  ;;  %v2106_v25 = vld [vmem:[%s3273_s3 + $0x74] sm:$0xf]  ;;  %v2008_v5 = vld [vmem:[%s3273_s3 + $0x78] sm:$0xf0] }
 0x122   :  { %1249 = vmatpush.bf16.msrb.mxu0 %v3328_v57  ;;  %v1987_v22 = vor.u32 %v2100_v46, %v1984_v33  ;;  %v2000_v34 = vld [vmem:[%s3273_s3 + $0x68] sm:$0xf0]  ;;  %v2107_v30 = vld [vmem:[%s3273_s3 + $0x74] sm:$0xf0]  ;;  %v2024_v28 = vld [vmem:[%s3273_s3 + $0x98] sm:$0xf0] }
 0x123   :  { %1163 = vmatpush.bf16.msrb.mxu3 %v699_v31  ;;  %v2003_v48 = vor.u32 %v2104_v37, %v2000_v34  ;;  %v2111_v37 = vld [vmem:[%s3273_s3 + $0x94] sm:$0xf0] }
 0x124   :  { %1337 = vmatpush.bf16.msrb.mxu1 %v708_v18  ;;  %v2954_v58 = vpop.permute.xlu2 %764  ;;  %v1992_v18 = vld [vmem:[%s3273_s3 + $0x58] sm:$0xf0] }
 0x125   :  { %1072 = vmatpush.bf16.msrb.mxu2 %v687_v62  ;;  %v1995_v62 = vor.u32 %v2102_v41, %v1992_v18 }
 0x126   :  { %1164 = vmatmul.bf16.vlgmr.msrb.gmra.mxu3 %v1955_v55  ;;  %1250 = vmatpush.bf16.msrb.mxu0 %v688_v54 }
 0x128   :  { %1338 = vmatpush.bf16.msrb.mxu1 %v706_v19  ;;  %v2964_v2 = vpop.permute.xlu0 %769  ;;  %v1991_v19 = vor.u32 %v2103_v61, %v1990_v1 }
 0x129   :  { %1073 = vmatpush.bf16.msrb.mxu2 %v3333_v35  ;;  %v1998_v35 = vld [vmem:[%s3273_s3 + $0x60] sm:$0xf] }
 0x12a   :  { %1251 = vmatpush.bf16.msrb.mxu0 %v3334_v51 }
 0x12c   :  { %1339 = vmatpush.bf16.msrb.mxu1 %v704_v29  ;;  %v2966_v53 = vpop.permute.xlu2 %779  ;;  %v2105_v29 = vld [vmem:[%s3273_s3 + $0x64] sm:$0xf0] }
 0x12d   :  { %1074 = vmatpush.bf16.msrb.mxu2 %v3336_v6  ;;  %v1999_v63 = vor.u32 %v2105_v29, %v1998_v35 }
 0x12e   :  { %1252 = vmatpush.bf16.msrb.mxu0 %v3337_v27 }
 0x130   :  { %1340 = vmatpush.bf16.msrb.mxu1 %v702_v56  ;;  %1075 = vmatmul.bf16.vlgmr.msrb.gmra.mxu2 %v1951_v7  ;;  %v2976_v31 = vpop.permute.xlu0 %784 }
 0x131   :  { %2130 = vmatpush.bf16.msra.mxu2 %v2822_v9  ;;  %1253 = vmatmul.bf16.vlgmr.msrb.gmra.mxu0 %v1951_v7  ;;  %v1958_v9 = vld [vmem:[%s3273_s3 + $0x10] sm:$0xf]  ;;  %v2011_v7 = vor.u32 %v2106_v25, %v2008_v5 }
 0x132   :  { %v1959_v60 = vor.u32 %v2095_v39, %v1958_v9 }
 0x134   :  { %1341 = vmatpush.bf16.msrb.mxu1 %v700_v32  ;;  %v2108_v32 = vld [vmem:[%s3273_s3 + $0x84] sm:$0xf] }
 0x135   :  { %2131 = vmatpush.bf16.msra.mxu2 %v2838_v8  ;;  %v2096_v8 = vld [vmem:[%s3273_s3 + $0x24] sm:$0xf] }
 0x136   :  { %1169 = vmatmul.bf16.gmra.mxu3 %v1963_v42 }
 0x137   :  { %1342 = vmatmul.bf16.vlgmr.msrb.gmra.mxu1 %v1955_v55  ;;  %v2984_v55 = vpop.permute.xlu2 %794 }
 0x139   :  { %2132 = vmatpush.bf16.msra.mxu2 %v2855_v3  ;;  %v1968_v3 = vld [vmem:[%s3273_s3 + $0x28] sm:$0xf0] }
 0x13a   :  { %v1971_v14 = vor.u32 %v2096_v8, %v1968_v3 }
 0x13d   :  { %2133 = vmatpush.bf16.msra.mxu2 %v2872_v45  ;;  %v2097_v45 = vld [vmem:[%s3273_s3 + $0x24] sm:$0xf0] }
 0x13e   :  { %v1967_v47 = vor.u32 %v2097_v45, %v1966_v26  ;;  %v2109_v26 = vld [vmem:[%s3273_s3 + $0x84] sm:$0xf0] }
 0x13f   :  { %v2990_v36 = vpop.permute.xlu2 %809 }
 0x140   :  { %1080 = vmatmul.bf16.gmra.mxu2 %v1959_v60 }
 0x141   :  { %2134 = vmatpush.bf16.msra.mxu2 %v3328_v57  ;;  %1258 = vmatmul.bf16.gmra.mxu0 %v1959_v60  ;;  %v2986_v57 = vpop.permute.xlu1 %789 }
 0x145   :  { %2135 = vmatpush.bf16.msra.mxu2 %v688_v54  ;;  %v2988_v54 = vpop.permute.xlu0 %799 }
 0x146   :  { %1174 = vmatmul.bf16.gmra.mxu3 %v1971_v14 }
 0x147   :  { %1347 = vmatmul.bf16.gmra.mxu1 %v1963_v42  ;;  %v3008_v0 = vpop.permute.xlu2 %824  ;;  %v2016_v42 = vld [vmem:[%s3273_s3 + $0x88] sm:$0xf0] }
 0x148   :  { %v2019_v60 = vor.u32 %v2108_v32, %v2016_v42  ;;  %v2112_v32 = vld [vmem:[%s3273_s3 + $0xa4] sm:$0xf]  ;;  %v2032_v42 = vld [vmem:[%s3273_s3 + $0xa8] sm:$0xf0] }
 0x149   :  { %2136 = vmatpush.bf16.msra.mxu2 %v3334_v51  ;;  %v2992_v13 = vpop.permute.xlu1 %804 }
 0x14d   :  { %2137 = vmatpush.bf16.msra.mxu2 %v3337_v27  ;;  %v3006_v16 = vpop.permute.xlu0 %814  ;;  %v2006_v27 = vld [vmem:[%s3273_s3 + $0x70] sm:$0xf] }
 0x14e   :  { %v2007_v52 = vor.u32 %v2107_v30, %v2006_v27 }
 0x14f   :  { %v3020_v51 = vpop.permute.xlu2 %839 }
 0x150   :  { %1085 = vmatmul.bf16.gmra.mxu2 %v1967_v47 }
 0x151   :  { %1263 = vmatmul.bf16.gmra.mxu0 %v1967_v47  ;;  %v3010_v15 = vpop.permute.xlu1 %819 }
 0x155   :  { %v3018_v10 = vpop.permute.xlu0 %829 }
 0x156   :  { %1179 = vmatmul.bf16.gmra.mxu3 %v1979_v49 }
 0x157   :  { %1352 = vmatmul.bf16.gmra.mxu1 %v1971_v14  ;;  %v3032_v6 = vpop.permute.xlu2 %854  ;;  %v2014_v14 = vld [vmem:[%s3273_s3 + $0x80] sm:$0xf] }
 0x158   :  { %v2015_v11 = vor.u32 %v2109_v26, %v2014_v14 }
 0x159   :  { %v3022_v21 = vpop.permute.xlu1 %834 }
 0x15d   :  { %v3030_v12 = vpop.permute.xlu0 %844 }
 0x15f   :  { %v3050_v9 = vpop.permute.xlu2 %869 }
 0x160   :  { %1090 = vmatmul.bf16.gmra.mxu2 %v1975_v43 }
 0x161   :  { %1268 = vmatmul.bf16.gmra.mxu0 %v1975_v43  ;;  %v3034_v56 = vpop.permute.xlu1 %849 }
 0x165   :  { %v3042_v38 = vpop.permute.xlu0 %859 }
 0x166   :  { %1184 = vmatmul.bf16.gmra.mxu3 %v1987_v22 }
 0x167   :  { %1357 = vmatmul.bf16.gmra.mxu1 %v1979_v49  ;;  %v3062_v45 = vpop.permute.xlu2 %884  ;;  %v2110_v49 = vld [vmem:[%s3273_s3 + $0x94] sm:$0xf] }
 0x168   :  { %v2027_v43 = vor.u32 %v2110_v49, %v2024_v28 }
 0x169   :  { %v3052_v39 = vpop.permute.xlu1 %864 }
 0x16d   :  { %v3054_v8 = vpop.permute.xlu0 %874 }
 0x16f   :  { %v3076_v41 = vpop.permute.xlu2 %899 }
 0x170   :  { %1095 = vmatmul.bf16.gmra.mxu2 %v1983_v23 }
 0x171   :  { %1273 = vmatmul.bf16.gmra.mxu0 %v1983_v23  ;;  %v3064_v47 = vpop.permute.xlu1 %879 }
 0x175   :  { %v3072_v46 = vpop.permute.xlu0 %889 }
 0x176   :  { %1189 = vmatmul.bf16.gmra.mxu3 %v1995_v62 }
 0x177   :  { %1362 = vmatmul.bf16.gmra.mxu1 %v1987_v22 }
 0x179   :  { %v3078_v18 = vpop.permute.xlu1 %894 }
 0x17d   :  { %v3088_v5 = vpop.permute.xlu0 %904 }
 0x180   :  { %1100 = vmatmul.bf16.gmra.mxu2 %v1991_v19 }
 0x181   :  { %1278 = vmatmul.bf16.gmra.mxu0 %v1991_v19  ;;  %v2022_v19 = vld [vmem:[%s3273_s3 + $0x90] sm:$0xf] }
 0x182   :  { %v2023_v25 = vor.u32 %v2111_v37, %v2022_v19 }
 0x186   :  { %1194 = vmatmul.bf16.gmra.mxu3 %v2003_v48 }
 0x187   :  { %1367 = vmatmul.bf16.gmra.mxu1 %v1995_v62 }
 0x190   :  { %1105 = vmatmul.bf16.gmra.mxu2 %v1999_v63 }
 0x191   :  { %1283 = vmatmul.bf16.gmra.mxu0 %v1999_v63 }
 0x196   :  { %1199 = vmatmul.bf16.gmra.mxu3 %v2011_v7 }
 0x197   :  { %1372 = vmatmul.bf16.gmra.mxu1 %v2003_v48 }
 0x1a0   :  { %1110 = vmatmul.bf16.gmra.mxu2 %v2007_v52 }
 0x1a1   :  { %1288 = vmatmul.bf16.gmra.mxu0 %v2007_v52 }
 0x1a6   :  { %1204 = vmatmul.bf16.gmra.mxu3 %v2019_v60 }
 0x1a7   :  { %1377 = vmatmul.bf16.gmra.mxu1 %v2011_v7 }
 0x1a9   :  { %v1165_v3 = vpop.f32.mrf.mxu3 }
 0x1ae   :  { %v1254_v20 = vpop.f32.mrf.mxu0 }
 0x1af   :  { %v1255_v33 = vadd.f32 %v1254_v20, %v2944_v50  ;;  %v2035_v20 = vor.u32 %v2112_v32, %v2032_v42 }
 0x1b0   :  { %1115 = vmatmul.bf16.gmra.mxu2 %v2015_v11 }
 0x1b1   :  { %v1167_v4 = vpop.f32.mrf.mxu3  ;;  %1293 = vmatmul.bf16.gmra.mxu0 %v2015_v11 }
 0x1b3   :  { %v1076_v22 = vpop.f32.mrf.mxu2 }
 0x1b4   :  { %v1343_v59 = vpop.f32.mrf.mxu1  ;;  %v1077_v40 = vadd.f32 %v1076_v22, %v2944_v50 }
 0x1b5   :  { %v1344_v23 = vadd.f32 %v1343_v59, %v1255_v33 }
 0x1b6   :  { %1209 = vmatmul.bf16.gmra.mxu3 %v2027_v43  ;;  %v1166_v62 = vadd.f32 %v1165_v3, %v1077_v40  ;;  %v1256_v1 = vpop.f32.mrf.mxu0  ;;  %v1522_v3 = vpop.permute.xlu1 %1521 }
 0x1b7   :  { %1382 = vmatmul.bf16.gmra.mxu1 %v2019_v60  ;;  %v1257_v50 = vadd.f32 %v1256_v1, %v2946_v44  ;;  %v1424_v35 = vmax.f32 %v1344_v23, 0.0  ;;  %v1527_v60 = vpop.permute.xlu2 %1526 }
 0x1b8   :  { %v1423_v7 = vmax.f32 %v1166_v62, 0.0 }
 0x1b9   :  { %v1170_v61 = vpop.f32.mrf.mxu3  ;;  %v1680_v14 = vmul.f32 %v1522_v3, %v1424_v35 }
 0x1ba   :  { %v1679_v49 = vmul.f32 %v1522_v3, %v1423_v7 }
 0x1bb   :  { %v1078_v34 = vpop.f32.mrf.mxu2 }
 0x1bc   :  { %v1345_v48 = vpop.f32.mrf.mxu1  ;;  %v1079_v29 = vadd.f32 %v1078_v34, %v2946_v44 }
 0x1bd   :  { %v1346_v63 = vadd.f32 %v1345_v48, %v1257_v50  ;;  %v1532_v50 = vpop.permute.xlu0 %1531 }
 0x1be   :  { %v1168_v30 = vadd.f32 %v1167_v4, %v1079_v29  ;;  %v1259_v52 = vpop.f32.mrf.mxu0  ;;  %v2030_v29 = vld [vmem:[%s3273_s3 + $0xa0] sm:$0xf] }
 0x1bf   :  { %v1426_v27 = vmax.f32 %v1346_v63, 0.0  ;;  %v1260_v33 = vadd.f32 %v1259_v52, %v2956_v24  ;;  %v2113_v63 = vld [vmem:[%s3273_s3 + $0xa4] sm:$0xf0] }
 0x1c0   :  { %v1425_v26 = vmax.f32 %v1168_v30, 0.0  ;;  %1120 = vmatmul.bf16.gmra.mxu2 %v2023_v25  ;;  %v2031_v32 = vor.u32 %v2113_v63, %v2030_v29 }
 0x1c1   :  { %v1682_v44 = vmul.f32 %v1527_v60, %v1426_v27  ;;  %v1172_v11 = vpop.f32.mrf.mxu3  ;;  %1298 = vmatmul.bf16.gmra.mxu0 %v2023_v25 }
 0x1c2   :  { %v1681_v4 = vmul.f32 %v1527_v60, %v1425_v26  ;;  %v1537_v26 = vpop.permute.xlu1 %1536 }
 0x1c3   :  { %v1780_v28 = vadd.f32 %v1682_v44, %v1680_v14  ;;  %v1081_v22 = vpop.f32.mrf.mxu2  ;;  %v2114_v14 = vld [vmem:[%s3273_s3 + $0xb4] sm:$0xf]  ;;  %v2040_v44 = vld [vmem:[%s3273_s3 + $0xb8] sm:$0xf0] }
 0x1c4   :  { %v1348_v59 = vpop.f32.mrf.mxu1  ;;  %v1743_v40 = vadd.f32 %v1681_v4, %v1679_v49  ;;  %v1082_v23 = vadd.f32 %v1081_v22, %v2956_v24 }
 0x1c5   :  { %v1349_v62 = vadd.f32 %v1348_v59, %v1260_v33 }
 0x1c6   :  { %1214 = vmatmul.bf16.gmra.mxu3 %v2035_v20  ;;  %v1171_v19 = vadd.f32 %v1170_v61, %v1082_v23  ;;  %v1261_v37 = vpop.f32.mrf.mxu0 }
 0x1c7   :  { %v1428_v1 = vmax.f32 %v1349_v62, 0.0  ;;  %1387 = vmatmul.bf16.gmra.mxu1 %v2027_v43  ;;  %v1262_v7 = vadd.f32 %v1261_v37, %v2954_v58 }
 0x1c8   :  { %v1427_v48 = vmax.f32 %v1171_v19, 0.0 }
 0x1c9   :  { %v1684_v34 = vmul.f32 %v1532_v50, %v1428_v1  ;;  %v1175_v35 = vpop.f32.mrf.mxu3 }
 0x1ca   :  { %v1683_v24 = vmul.f32 %v1532_v50, %v1427_v48 }
 0x1cb   :  { %v1781_v25 = vadd.f32 %v1780_v28, %v1684_v34  ;;  %v1083_v27 = vpop.f32.mrf.mxu2  ;;  %v1542_v34 = vpop.permute.xlu2 %1541 }
 0x1cc   :  { %v1350_v61 = vpop.f32.mrf.mxu1  ;;  %v1744_v30 = vadd.f32 %v1743_v40, %v1683_v24  ;;  %v1084_v43 = vadd.f32 %v1083_v27, %v2954_v58  ;;  %v2043_v58 = vor.u32 %v2114_v14, %v2040_v44  ;;  %v2115_v24 = vld [vmem:[%s3273_s3 + $0xb4] sm:$0xf0]  ;;  %v2048_v14 = vld [vmem:[%s3273_s3 + $0xc8] sm:$0xf0]  ;;  %v1547_v44 = vpop.permute.xlu0 %1546 }
 0x1cd   :  { %v1351_v52 = vadd.f32 %v1350_v61, %v1262_v7 }
 0x1ce   :  { %v1173_v60 = vadd.f32 %v1172_v11, %v1084_v43  ;;  %v1264_v3 = vpop.f32.mrf.mxu0 }
 0x1cf   :  { %v1430_v42 = vmax.f32 %v1351_v52, 0.0  ;;  %v1265_v11 = vadd.f32 %v1264_v3, %v2964_v2  ;;  %v2116_v3 = vld [vmem:[%s3273_s3 + $0xc4] sm:$0xf] }
 0x1d0   :  { %v1429_v28 = vmax.f32 %v1173_v60, 0.0  ;;  %1125 = vmatmul.bf16.gmra.mxu2 %v2031_v32 }
 0x1d1   :  { %v1686_v49 = vmul.f32 %v1537_v26, %v1430_v42  ;;  %v1177_v4 = vpop.f32.mrf.mxu3  ;;  %1303 = vmatmul.bf16.gmra.mxu0 %v2031_v32 }
 0x1d2   :  { %v1685_v22 = vmul.f32 %v1537_v26, %v1429_v28 }
 0x1d3   :  { %v1782_v33 = vadd.f32 %v1781_v25, %v1686_v49  ;;  %v1086_v59 = vpop.f32.mrf.mxu2  ;;  %v2038_v25 = vld [vmem:[%s3273_s3 + $0xb0] sm:$0xf] }
 0x1d4   :  { %v1353_v40 = vpop.f32.mrf.mxu1  ;;  %v1745_v23 = vadd.f32 %v1744_v30, %v1685_v22  ;;  %v1087_v62 = vadd.f32 %v1086_v59, %v2964_v2  ;;  %v2039_v52 = vor.u32 %v2115_v24, %v2038_v25  ;;  %v2046_v25 = vld [vmem:[%s3273_s3 + $0xc0] sm:$0xf]  ;;  %v2117_v24 = vld [vmem:[%s3273_s3 + $0xc4] sm:$0xf0] }
 0x1d5   :  { %v1354_v1 = vadd.f32 %v1353_v40, %v1265_v11 }
 0x1d6   :  { %1219 = vmatmul.bf16.gmra.mxu3 %v2043_v58  ;;  %v1176_v37 = vadd.f32 %v1175_v35, %v1087_v62  ;;  %v1266_v50 = vpop.f32.mrf.mxu0 }
 0x1d7   :  { %v1432_v19 = vmax.f32 %v1354_v1, 0.0  ;;  %1392 = vmatmul.bf16.gmra.mxu1 %v2035_v20  ;;  %v1267_v27 = vadd.f32 %v1266_v50, %v2968_v17  ;;  %v1552_v50 = vpop.permute.xlu1 %1551 }
 0x1d8   :  { %v1431_v29 = vmax.f32 %v1176_v37, 0.0 }
 0x1d9   :  { %v1688_v48 = vmul.f32 %v1542_v34, %v1432_v19  ;;  %v1180_v63 = vpop.f32.mrf.mxu3 }
 0x1da   :  { %v1687_v2 = vmul.f32 %v1542_v34, %v1431_v29 }
 0x1db   :  { %v1783_v7 = vadd.f32 %v1782_v33, %v1688_v48  ;;  %v1088_v61 = vpop.f32.mrf.mxu2 }
 0x1dc   :  { %v1355_v35 = vpop.f32.mrf.mxu1  ;;  %v1746_v30 = vadd.f32 %v1745_v23, %v1687_v2  ;;  %v1089_v20 = vadd.f32 %v1088_v61, %v2968_v17  ;;  %v2051_v17 = vor.u32 %v2116_v3, %v2048_v14 }
 0x1dd   :  { %v1356_v43 = vadd.f32 %v1355_v35, %v1267_v27 }
 0x1de   :  { %v1178_v42 = vadd.f32 %v1177_v4, %v1089_v20  ;;  %v1269_v60 = vpop.f32.mrf.mxu0 }
 0x1df   :  { %v1434_v32 = vmax.f32 %v1356_v43, 0.0  ;;  %v1270_v4 = vadd.f32 %v1269_v60, %v2966_v53  ;;  %v1557_v60 = vpop.permute.xlu2 %1556 }
 0x1e0   :  { %v1433_v49 = vmax.f32 %v1178_v42, 0.0  ;;  %1130 = vmatmul.bf16.gmra.mxu2 %v2039_v52  ;;  %v2056_v42 = vld [vmem:[%s3273_s3 + $0xd8] sm:$0xf0] }
 0x1e1   :  { %v1690_v26 = vmul.f32 %v1547_v44, %v1434_v32  ;;  %v1182_v28 = vpop.f32.mrf.mxu3  ;;  %1308 = vmatmul.bf16.gmra.mxu0 %v2039_v52  ;;  %v2118_v32 = vld [vmem:[%s3273_s3 + $0xd4] sm:$0xf] }
 0x1e2   :  { %v1689_v22 = vmul.f32 %v1547_v44, %v1433_v49 }
 0x1e3   :  { %v1784_v33 = vadd.f32 %v1783_v7, %v1690_v26  ;;  %v1091_v11 = vpop.f32.mrf.mxu2 }
 0x1e4   :  { %v1358_v59 = vpop.f32.mrf.mxu1  ;;  %v1747_v40 = vadd.f32 %v1746_v30, %v1689_v22  ;;  %v1092_v23 = vadd.f32 %v1091_v11, %v2966_v53  ;;  %v2047_v30 = vor.u32 %v2117_v24, %v2046_v25 }
 0x1e5   :  { %v1359_v62 = vadd.f32 %v1358_v59, %v1270_v4 }
 0x1e6   :  { %1224 = vmatmul.bf16.gmra.mxu3 %v2051_v17  ;;  %v1181_v19 = vadd.f32 %v1180_v63, %v1092_v23  ;;  %v1271_v37 = vpop.f32.mrf.mxu0 }
 0x1e7   :  { %v1436_v1 = vmax.f32 %v1359_v62, 0.0  ;;  %1397 = vmatmul.bf16.gmra.mxu1 %v2043_v58  ;;  %v1272_v2 = vadd.f32 %v1271_v37, %v2976_v31 }
 0x1e8   :  { %v1435_v48 = vmax.f32 %v1181_v19, 0.0 }
 0x1e9   :  { %v1692_v34 = vmul.f32 %v1552_v50, %v1436_v1  ;;  %v1185_v29 = vpop.f32.mrf.mxu3  ;;  %v1562_v1 = vpop.permute.xlu0 %1561 }
 0x1ea   :  { %v1691_v53 = vmul.f32 %v1552_v50, %v1435_v48  ;;  %v2119_v48 = vld [vmem:[%s3273_s3 + $0xd4] sm:$0xf0] }
 0x1eb   :  { %v1785_v7 = vadd.f32 %v1784_v33, %v1692_v34  ;;  %v1093_v27 = vpop.f32.mrf.mxu2  ;;  %v2054_v34 = vld [vmem:[%s3273_s3 + $0xd0] sm:$0xf] }
 0x1ec   :  { %v1360_v63 = vpop.f32.mrf.mxu1  ;;  %v1748_v61 = vadd.f32 %v1747_v40, %v1691_v53  ;;  %v1094_v58 = vadd.f32 %v1093_v27, %v2976_v31  ;;  %v2059_v31 = vor.u32 %v2118_v32, %v2056_v42  ;;  %v2055_v27 = vor.u32 %v2119_v48, %v2054_v34 }
 0x1ed   :  { %v1361_v35 = vadd.f32 %v1360_v63, %v1272_v2 }
 0x1ee   :  { %v1183_v43 = vadd.f32 %v1182_v28, %v1094_v58  ;;  %v1274_v52 = vpop.f32.mrf.mxu0 }
 0x1ef   :  { %v1438_v20 = vmax.f32 %v1361_v35, 0.0  ;;  %v1275_v28 = vadd.f32 %v1274_v52, %v2986_v57  ;;  %v2120_v35 = vld [vmem:[%s3273_s3 + $0xe4] sm:$0xf] }
 0x1f0   :  { %v1437_v14 = vmax.f32 %v1183_v43, 0.0  ;;  %1135 = vmatmul.bf16.gmra.mxu2 %v2047_v30 }
 0x1f1   :  { %v1694_v3 = vmul.f32 %v1557_v60, %v1438_v20  ;;  %v1187_v44 = vpop.f32.mrf.mxu3  ;;  %1313 = vmatmul.bf16.gmra.mxu0 %v2047_v30  ;;  %v2064_v30 = vld [vmem:[%s3273_s3 + $0xe8] sm:$0xf0]  ;;  %v1567_v20 = vpop.permute.xlu1 %1566 }
 0x1f2   :  { %v1693_v49 = vmul.f32 %v1557_v60, %v1437_v14 }
 0x1f3   :  { %v1786_v26 = vadd.f32 %v1785_v7, %v1694_v3  ;;  %v1096_v33 = vpop.f32.mrf.mxu2 }
 0x1f4   :  { %v1363_v22 = vpop.f32.mrf.mxu1  ;;  %v1749_v4 = vadd.f32 %v1748_v61, %v1693_v49  ;;  %v1097_v11 = vadd.f32 %v1096_v33, %v2986_v57 }
 0x1f5   :  { %v1364_v59 = vadd.f32 %v1363_v22, %v1275_v28 }
 0x1f6   :  { %1229 = vmatmul.bf16.gmra.mxu3 %v2059_v31  ;;  %v1186_v23 = vadd.f32 %v1185_v29, %v1097_v11  ;;  %v1276_v62 = vpop.f32.mrf.mxu0  ;;  %v1572_v11 = vpop.permute.xlu2 %1571 }
 0x1f7   :  { %v1440_v40 = vmax.f32 %v1364_v59, 0.0  ;;  %1402 = vmatmul.bf16.gmra.mxu1 %v2051_v17  ;;  %v1277_v24 = vadd.f32 %v1276_v62, %v2984_v55  ;;  %v2062_v62 = vld [vmem:[%s3273_s3 + $0xe0] sm:$0xf] }
 0x1f8   :  { %v1439_v37 = vmax.f32 %v1186_v23, 0.0 }
 0x1f9   :  { %v1696_v19 = vmul.f32 %v1562_v1, %v1440_v40  ;;  %v1190_v50 = vpop.f32.mrf.mxu3 }
 0x1fa   :  { %v1695_v57 = vmul.f32 %v1562_v1, %v1439_v37  ;;  %v2121_v1 = vld [vmem:[%s3273_s3 + $0xe4] sm:$0xf0] }
 0x1fb   :  { %v1787_v25 = vadd.f32 %v1786_v26, %v1696_v19  ;;  %v1098_v7 = vpop.f32.mrf.mxu2 }
 0x1fc   :  { %v1365_v29 = vpop.f32.mrf.mxu1  ;;  %v1750_v53 = vadd.f32 %v1749_v4, %v1695_v57  ;;  %v1099_v17 = vadd.f32 %v1098_v7, %v2984_v55  ;;  %v2067_v55 = vor.u32 %v2120_v35, %v2064_v30  ;;  %v2063_v57 = vor.u32 %v2121_v1, %v2062_v62 }
 0x1fd   :  { %v1366_v2 = vadd.f32 %v1365_v29, %v1277_v24 }
 0x1fe   :  { %v1188_v61 = vadd.f32 %v1187_v44, %v1099_v17  ;;  %v1279_v58 = vpop.f32.mrf.mxu0  ;;  %v2072_v17 = vld [vmem:[%s3273_s3 + $0xf8] sm:$0xf0] }
 0x1ff   :  { %v1442_v63 = vmax.f32 %v1366_v2, 0.0  ;;  %v1280_v3 = vadd.f32 %v1279_v58, %v2988_v54  ;;  %v1577_v2 = vpop.permute.xlu0 %1576 }
 0x200   :  { %v1441_v52 = vmax.f32 %v1188_v61, 0.0  ;;  %1140 = vmatmul.bf16.gmra.mxu2 %v2055_v27 }
 0x201   :  { %v1698_v43 = vmul.f32 %v1567_v20, %v1442_v63  ;;  %v1192_v32 = vpop.f32.mrf.mxu3  ;;  %1318 = vmatmul.bf16.gmra.mxu0 %v2055_v27 }
 0x202   :  { %v1697_v60 = vmul.f32 %v1567_v20, %v1441_v52 }
 0x203   :  { %v1788_v42 = vadd.f32 %v1787_v25, %v1698_v43  ;;  %v1101_v14 = vpop.f32.mrf.mxu2 }
 0x204   :  { %v1368_v44 = vpop.f32.mrf.mxu1  ;;  %v1751_v26 = vadd.f32 %v1750_v53, %v1697_v60  ;;  %v1102_v49 = vadd.f32 %v1101_v14, %v2988_v54  ;;  %v2122_v53 = vld [vmem:[%s3273_s3 + $0xf4] sm:$0xf] }
 0x205   :  { %v1369_v28 = vadd.f32 %v1368_v44, %v1280_v3  ;;  %v1582_v44 = vpop.permute.xlu1 %1581 }
 0x206   :  { %1234 = vmatmul.bf16.gmra.mxu3 %v2067_v55  ;;  %v1191_v22 = vadd.f32 %v1190_v50, %v1102_v49  ;;  %v1281_v4 = vpop.f32.mrf.mxu0 }
 0x207   :  { %v1444_v33 = vmax.f32 %v1369_v28, 0.0  ;;  %1407 = vmatmul.bf16.gmra.mxu1 %v2059_v31  ;;  %v1282_v37 = vadd.f32 %v1281_v4, %v2992_v13 }
 0x208   :  { %v1443_v40 = vmax.f32 %v1191_v22, 0.0  ;;  %v2123_v22 = vld [vmem:[%s3273_s3 + $0xf4] sm:$0xf0] }
 0x209   :  { %v1700_v59 = vmul.f32 %v1572_v11, %v1444_v33  ;;  %v1195_v23 = vpop.f32.mrf.mxu3  ;;  %v2070_v33 = vld [vmem:[%s3273_s3 + $0xf0] sm:$0xf]  ;;  %s2172_s3 = smov [#allocation3]  }
 0x20a   :  { %v1699_v54 = vmul.f32 %v1572_v11, %v1443_v40  ;;  %v2071_v1 = vor.u32 %v2123_v22, %v2070_v33  ;;  %s1841_s19 = sshll.u32 %s2172_s3, 4  ;;  %s1842_s19 = int_to_ptr.vmem [resolvable:$true] %s1841_s19 }
 0x20b   :  { %v1789_v19 = vadd.f32 %v1788_v42, %v1700_v59  ;;  %v1103_v34 = vpop.f32.mrf.mxu2 }
 0x20c   :  { %v1370_v50 = vpop.f32.mrf.mxu1  ;;  %v1752_v48 = vadd.f32 %v1751_v26, %v1699_v54  ;;  %v1104_v31 = vadd.f32 %v1103_v34, %v2992_v13  ;;  %v2075_v13 = vor.u32 %v2122_v53, %v2072_v17  ;;  %v1587_v34 = vpop.permute.xlu2 %1586 }
 0x20d   :  { %v1371_v25 = vadd.f32 %v1370_v50, %v1282_v37 }
 0x20e   :  { %v1193_v7 = vadd.f32 %v1192_v32, %v1104_v31  ;;  %v1284_v29 = vpop.f32.mrf.mxu0 }
 0x20f   :  { %v1446_v24 = vmax.f32 %v1371_v25, 0.0  ;;  %v1285_v30 = vadd.f32 %v1284_v29, %v2990_v36 }
 0x210   :  { %v1445_v63 = vmax.f32 %v1193_v7, 0.0  ;;  %1145 = vmatmul.bf16.gmra.mxu2 %v2063_v57 }
 0x211   :  { %v1702_v27 = vmul.f32 %v1577_v2, %v1446_v24  ;;  %v1197_v61 = vpop.f32.mrf.mxu3  ;;  %1323 = vmatmul.bf16.gmra.mxu0 %v2063_v57 }
 0x212   :  { %v1701_v35 = vmul.f32 %v1577_v2, %v1445_v63 }
 0x213   :  { %v1790_v58 = vadd.f32 %v1789_v19, %v1702_v27  ;;  %v1106_v20 = vpop.f32.mrf.mxu2 }
 0x214   :  { %v1373_v43 = vpop.f32.mrf.mxu1  ;;  %v1753_v52 = vadd.f32 %v1752_v48, %v1701_v35  ;;  %v1107_v32 = vadd.f32 %v1106_v20, %v2990_v36 }
 0x215   :  { %v1374_v42 = vadd.f32 %v1373_v43, %v1285_v30 }
 0x216   :  { %1239 = vmatmul.bf16.gmra.mxu3 %v2075_v13  ;;  %v1196_v3 = vadd.f32 %v1195_v23, %v1107_v32  ;;  %v1286_v14 = vpop.f32.mrf.mxu0 }
 0x217   :  { %v1448_v60 = vmax.f32 %v1374_v42, 0.0  ;;  %1412 = vmatmul.bf16.gmra.mxu1 %v2067_v55  ;;  %v1287_v11 = vadd.f32 %v1286_v14, %v3006_v16 }
 0x218   :  { %v1447_v49 = vmax.f32 %v1196_v3, 0.0 }
 0x219   :  { %v1704_v26 = vmul.f32 %v1582_v44, %v1448_v60  ;;  %v1200_v28 = vpop.f32.mrf.mxu3 }
 0x21a   :  { %v1703_v36 = vmul.f32 %v1582_v44, %v1447_v49  ;;  %v1597_v49 = vpop.permute.xlu1 %1596 }
 0x21b   :  { %v1791_v4 = vadd.f32 %v1790_v58, %v1704_v26  ;;  %v1108_v59 = vpop.f32.mrf.mxu2 }
 0x21c   :  { %v1375_v40 = vpop.f32.mrf.mxu1  ;;  %v1754_v23 = vadd.f32 %v1753_v52, %v1703_v36  ;;  %v1109_v55 = vadd.f32 %v1108_v59, %v3006_v16 }
 0x21d   :  { %v1376_v62 = vadd.f32 %v1375_v40, %v1287_v11 }
 0x21e   :  { %v1198_v54 = vadd.f32 %v1197_v61, %v1109_v55  ;;  %v1289_v37 = vpop.f32.mrf.mxu0  ;;  %v1592_v61 = vpop.permute.xlu0 %1591 }
 0x21f   :  { %v1450_v19 = vmax.f32 %v1376_v62, 0.0  ;;  %v1290_v24 = vadd.f32 %v1289_v37, %v3010_v15 }
 0x220   :  { %v1449_v48 = vmax.f32 %v1198_v54, 0.0  ;;  %1150 = vmatmul.bf16.gmra.mxu2 %v2071_v1  ;;  %v1602_v54 = vpop.permute.xlu2 %1601 }
 0x221   :  { %v1706_v50 = vmul.f32 %v1587_v34, %v1450_v19  ;;  %v1202_v31 = vpop.f32.mrf.mxu3 }
 0x222   :  { %v1705_v57 = vmul.f32 %v1587_v34, %v1449_v48 }
 0x223   :  { %v1792_v25 = vadd.f32 %v1791_v4, %v1706_v50  ;;  %v1111_v7 = vpop.f32.mrf.mxu2 }
 0x224   :  { %v1378_v29 = vpop.f32.mrf.mxu1  ;;  %v1755_v53 = vadd.f32 %v1754_v23, %v1705_v57  ;;  %v1112_v17 = vadd.f32 %v1111_v7, %v3010_v15 }
 0x225   :  { %v1379_v16 = vadd.f32 %v1378_v29, %v1290_v24 }
 0x226   :  { %v1201_v27 = vadd.f32 %v1200_v28, %v1112_v17  ;;  %v1291_v63 = vpop.f32.mrf.mxu0 }
 0x227   :  { %v1452_v2 = vmax.f32 %v1379_v16, 0.0  ;;  %1417 = vmatmul.bf16.gmra.mxu1 %v2075_v13  ;;  %v1292_v52 = vadd.f32 %v1291_v63, %v3008_v0  ;;  %v1607_v16 = vpop.permute.xlu0 %1606 }
 0x228   :  { %v1451_v35 = vmax.f32 %v1201_v27, 0.0 }
 0x229   :  { %v1708_v58 = vmul.f32 %v1592_v61, %v1452_v2  ;;  %v1205_v30 = vpop.f32.mrf.mxu3 }
 0x22a   :  { %v1707_v43 = vmul.f32 %v1592_v61, %v1451_v35 }
 0x22b   :  { %v1793_v20 = vadd.f32 %v1792_v25, %v1708_v58  ;;  %v1113_v32 = vpop.f32.mrf.mxu2 }
 0x22c   :  { %v1380_v42 = vpop.f32.mrf.mxu1  ;;  %v1756_v60 = vadd.f32 %v1755_v53, %v1707_v43  ;;  %v1114_v3 = vadd.f32 %v1113_v32, %v3008_v0 }
 0x22d   :  { %v1381_v14 = vadd.f32 %v1380_v42, %v1292_v52 }
 0x22e   :  { %v1203_v44 = vadd.f32 %v1202_v31, %v1114_v3  ;;  %v1294_v26 = vpop.f32.mrf.mxu0  ;;  %v1612_v3 = vpop.permute.xlu1 %1611 }
 0x22f   :  { %v1454_v15 = vmax.f32 %v1381_v14, 0.0  ;;  %v1295_v36 = vadd.f32 %v1294_v26, %v3018_v10 }
 0x230   :  { %v1453_v13 = vmax.f32 %v1203_v44, 0.0  ;;  %1328 = vmatmul.bf16.vlgmr.msra.gmra.mxu2 %v2071_v1 }
 0x231   :  { %v1710_v28 = vmul.f32 %v1597_v49, %v1454_v15  ;;  %v1207_v33 = vpop.f32.mrf.mxu3 }
 0x232   :  { %v1709_v4 = vmul.f32 %v1597_v49, %v1453_v13 }
 0x233   :  { %v1794_v22 = vadd.f32 %v1793_v20, %v1710_v28  ;;  %v1116_v11 = vpop.f32.mrf.mxu2 }
 0x234   :  { %v1383_v59 = vpop.f32.mrf.mxu1  ;;  %v1757_v40 = vadd.f32 %v1756_v60, %v1709_v4  ;;  %v1117_v23 = vadd.f32 %v1116_v11, %v3018_v10 }
 0x235   :  { %v1384_v55 = vadd.f32 %v1383_v59, %v1295_v36  ;;  %v1617_v59 = vpop.permute.xlu2 %1616 }
 0x236   :  { %v1206_v62 = vadd.f32 %v1205_v30, %v1117_v23  ;;  %v1296_v19 = vpop.f32.mrf.mxu0 }
 0x237   :  { %v1456_v0 = vmax.f32 %v1384_v55, 0.0  ;;  %v1297_v31 = vadd.f32 %v1296_v19, %v3022_v21 }
 0x238   :  { %v1455_v34 = vmax.f32 %v1206_v62, 0.0 }
 0x239   :  { %v1712_v37 = vmul.f32 %v1602_v54, %v1456_v0  ;;  %v1210_v50 = vpop.f32.mrf.mxu3 }
 0x23a   :  { %v1711_v1 = vmul.f32 %v1602_v54, %v1455_v34 }
 0x23b   :  { %v1795_v48 = vadd.f32 %v1794_v22, %v1712_v37  ;;  %v1118_v25 = vpop.f32.mrf.mxu2 }
 0x23c   :  { %v1385_v57 = vpop.f32.mrf.mxu1  ;;  %v1758_v24 = vadd.f32 %v1757_v40, %v1711_v1  ;;  %v1119_v7 = vadd.f32 %v1118_v25, %v3022_v21  ;;  %v1622_v25 = vpop.permute.xlu0 %1621 }
 0x23d   :  { %v1386_v29 = vadd.f32 %v1385_v57, %v1297_v31 }
 0x23e   :  { %v1208_v10 = vadd.f32 %v1207_v33, %v1119_v7  ;;  %v1299_v17 = vpop.f32.mrf.mxu0 }
 0x23f   :  { %v1458_v53 = vmax.f32 %v1386_v29, 0.0  ;;  %v1300_v35 = vadd.f32 %v1299_v17, %v3020_v51 }
 0x240   :  { %v1457_v27 = vmax.f32 %v1208_v10, 0.0 }
 0x241   :  { %v1714_v2 = vmul.f32 %v1607_v16, %v1458_v53  ;;  %v1212_v63 = vpop.f32.mrf.mxu3 }
 0x242   :  { %v1713_v58 = vmul.f32 %v1607_v16, %v1457_v27 }
 0x243   :  { %v1796_v61 = vadd.f32 %v1795_v48, %v1714_v2  ;;  %v1121_v30 = vpop.f32.mrf.mxu2 }
 0x244   :  { %v1388_v20 = vpop.f32.mrf.mxu1  ;;  %v1759_v43 = vadd.f32 %v1758_v24, %v1713_v58  ;;  %v1122_v52 = vadd.f32 %v1121_v30, %v3020_v51 }
 0x245   :  { %v1389_v32 = vadd.f32 %v1388_v20, %v1300_v35 }
 0x246   :  { %v1211_v21 = vadd.f32 %v1210_v50, %v1122_v52  ;;  %v1301_v60 = vpop.f32.mrf.mxu0 }
 0x247   :  { %v1460_v42 = vmax.f32 %v1389_v32, 0.0  ;;  %v1302_v28 = vadd.f32 %v1301_v60, %v3030_v12  ;;  %v3207_v60 = vpop.permute.xlu2 %1631 }
 0x248   :  { %v1459_v15 = vmax.f32 %v1211_v21, 0.0 }
 0x249   :  { %v1716_v14 = vmul.f32 %v1612_v3, %v1460_v42  ;;  %v1215_v44 = vpop.f32.mrf.mxu3 }
 0x24a   :  { %v1715_v49 = vmul.f32 %v1612_v3, %v1459_v15 }
 0x24b   :  { %v1797_v26 = vadd.f32 %v1796_v61, %v1716_v14  ;;  %v1123_v13 = vpop.f32.mrf.mxu2 }
 0x24c   :  { %v1390_v33 = vpop.f32.mrf.mxu1  ;;  %v1760_v22 = vadd.f32 %v1759_v43, %v1715_v49  ;;  %v1124_v4 = vadd.f32 %v1123_v13, %v3030_v12 }
 0x24d   :  { %v1391_v36 = vadd.f32 %v1390_v33, %v1302_v28 }
 0x24e   :  { %v1213_v51 = vadd.f32 %v1212_v63, %v1124_v4  ;;  %v1304_v40 = vpop.f32.mrf.mxu0 }
 0x24f   :  { %v1462_v11 = vmax.f32 %v1391_v36, 0.0  ;;  %v1305_v54 = vadd.f32 %v1304_v40, %v3034_v56 }
 0x250   :  { %v1461_v55 = vmax.f32 %v1213_v51, 0.0 }
 0x251   :  { %v1718_v23 = vmul.f32 %v1617_v59, %v1462_v11  ;;  %v1217_v0 = vpop.f32.mrf.mxu3 }
 0x252   :  { %v1717_v19 = vmul.f32 %v1617_v59, %v1461_v55 }
 0x253   :  { %v1798_v62 = vadd.f32 %v1797_v26, %v1718_v23  ;;  %v1126_v37 = vpop.f32.mrf.mxu2 }
 0x254   :  { %v1393_v34 = vpop.f32.mrf.mxu1  ;;  %v1761_v50 = vadd.f32 %v1760_v22, %v1717_v19  ;;  %v1127_v48 = vadd.f32 %v1126_v37, %v3034_v56  ;;  %v3203_v56 = vpop.permute.xlu1 %1626 }
 0x255   :  { %v1394_v1 = vadd.f32 %v1393_v34, %v1305_v54  ;;  %v3211_v22 = vpop.permute.xlu0 %1636 }
 0x256   :  { %v1216_v12 = vadd.f32 %v1215_v44, %v1127_v48  ;;  %v1306_v63 = vpop.f32.mrf.mxu0 }
 0x257   :  { %v1464_v31 = vmax.f32 %v1394_v1, 0.0 }
 0x258   :  { %v1463_v24 = vmax.f32 %v1216_v12, 0.0 }
 0x259   :  { %v1720_v57 = vmul.f32 %v1622_v25, %v1464_v31  ;;  %v1220_v7 = vpop.f32.mrf.mxu3 }
 0x25a   :  { %v1719_v53 = vmul.f32 %v1622_v25, %v1463_v24 }
 0x25b   :  { %v3200_v29 = vadd.f32 %v1798_v62, %v1720_v57  ;;  %v1128_v10 = vpop.f32.mrf.mxu2 }
 0x25c   :  { %v1395_v17 = vpop.f32.mrf.mxu1  ;;  %v1762_v16 = vadd.f32 %v1761_v50, %v1719_v53  ;;  %v1129_v2 = vadd.f32 %v1128_v10, %v3032_v6  ;;  %v3220_v53 = vpop.permute.xlu1 %1641 }
 0x25d   :  { %v3222_v10 = vpop.permute.xlu2 %1646 }
 0x25e   :  { %v1218_v27 = vadd.f32 %v1217_v0, %v1129_v2  ;;  %v1309_v3 = vpop.f32.mrf.mxu0 }
 0x260   :  { %v1465_v61 = vmax.f32 %v1218_v27, 0.0 }
 0x261   :  { %v1222_v58 = vpop.f32.mrf.mxu3 }
 0x262   :  { %v1721_v35 = vmul.f32 %v3203_v56, %v1465_v61 }
 0x263   :  { %v1131_v30 = vpop.f32.mrf.mxu2 }
 0x264   :  { %v1763_v20 = vadd.f32 %v1762_v16, %v1721_v35  ;;  %v1132_v43 = vadd.f32 %v1131_v30, %v3042_v38  ;;  %v1398_v52 = vpop.f32.mrf.mxu1  ;;  %v1307_v35 = vadd.f32 %v1306_v63, %v3032_v6 }
 0x266   :  { %v1221_v32 = vadd.f32 %v1220_v7, %v1132_v43  ;;  %v1311_v36 = vpop.f32.mrf.mxu0 }
 0x268   :  { %v1467_v42 = vmax.f32 %v1221_v32, 0.0 }
 0x269   :  { %v1225_v21 = vpop.f32.mrf.mxu3 }
 0x26a   :  { %v1723_v14 = vmul.f32 %v3207_v60, %v1467_v42  ;;  %v1396_v42 = vadd.f32 %v1395_v17, %v1307_v35  ;;  %v3237_v17 = vpop.permute.xlu1 %1656 }
 0x26b   :  { %v1133_v15 = vpop.f32.mrf.mxu2 }
 0x26c   :  { %v1764_v44 = vadd.f32 %v1763_v20, %v1723_v14  ;;  %v1134_v26 = vadd.f32 %v1133_v15, %v3052_v39  ;;  %v1400_v49 = vpop.f32.mrf.mxu1  ;;  %v1310_v14 = vadd.f32 %v1309_v3, %v3042_v38  ;;  %v1466_v38 = vmax.f32 %v1396_v42, 0.0 }
 0x26e   :  { %v1223_v28 = vadd.f32 %v1222_v58, %v1134_v26  ;;  %v1314_v55 = vpop.f32.mrf.mxu0 }
 0x270   :  { %v1469_v13 = vmax.f32 %v1223_v28, 0.0  ;;  %v3232_v28 = vpop.permute.xlu0 %1651 }
 0x271   :  { %v1227_v33 = vpop.f32.mrf.mxu3 }
 0x272   :  { %v1725_v4 = vmul.f32 %v3211_v22, %v1469_v13  ;;  %v1399_v13 = vadd.f32 %v1398_v52, %v1310_v14 }
 0x273   :  { %v1136_v11 = vpop.f32.mrf.mxu2 }
 0x274   :  { %v1765_v51 = vadd.f32 %v1764_v44, %v1725_v4  ;;  %v1403_v59 = vpop.f32.mrf.mxu1  ;;  %v1137_v25 = vadd.f32 %v1136_v11, %v3050_v9 }
 0x276   :  { %v1316_v54 = vpop.f32.mrf.mxu0  ;;  %v1226_v16 = vadd.f32 %v1225_v21, %v1137_v25 }
 0x278   :  { %v1471_v20 = vmax.f32 %v1226_v16, 0.0 }
 0x279   :  { %v1230_v40 = vpop.f32.mrf.mxu3 }
 0x27a   :  { %v1727_v6 = vmul.f32 %v3220_v53, %v1471_v20 }
 0x27b   :  { %v1138_v23 = vpop.f32.mrf.mxu2 }
 0x27c   :  { %v1405_v0 = vpop.f32.mrf.mxu1  ;;  %v1139_v7 = vadd.f32 %v1138_v23, %v3054_v8  ;;  %v1315_v23 = vadd.f32 %v1314_v55, %v3050_v9  ;;  %v1766_v25 = vadd.f32 %v1765_v51, %v1727_v6 }
 0x27e   :  { %v1319_v48 = vpop.f32.mrf.mxu0  ;;  %v1228_v27 = vadd.f32 %v1227_v33, %v1139_v7  ;;  %v1312_v33 = vadd.f32 %v1311_v36, %v3052_v39  ;;  %v1468_v39 = vmax.f32 %v1399_v13, 0.0  ;;  %v1404_v36 = vadd.f32 %v1403_v59, %v1315_v23 }
 0x27f   :  { %v1320_v55 = vadd.f32 %v1319_v48, %v3064_v47  ;;  %v1667_v48 = vpop.permute.xlu0 %1666 }
 0x280   :  { %v1473_v44 = vmax.f32 %v1228_v27, 0.0  ;;  %v1401_v3 = vadd.f32 %v1400_v49, %v1312_v33  ;;  %v1722_v49 = vmul.f32 %v3203_v56, %v1466_v38  ;;  %v1724_v51 = vmul.f32 %v3207_v60, %v1468_v39 }
 0x281   :  { %v1232_v19 = vpop.f32.mrf.mxu3 }
 0x283   :  { %v1141_v62 = vpop.f32.mrf.mxu2 }
 0x284   :  { %v3214_v34 = vpop.f32.mrf.mxu1  ;;  %v1142_v2 = vadd.f32 %v1141_v62, %v3064_v47  ;;  %v3240_v62 = vpop.permute.xlu2 %1661 }
 0x285   :  { %v1409_v20 = vadd.f32 %v3214_v34, %v1320_v55 }
 0x286   :  { %v1321_v57 = vpop.f32.mrf.mxu0  ;;  %v1231_v43 = vadd.f32 %v1230_v40, %v1142_v2  ;;  %v1470_v2 = vmax.f32 %v1401_v3, 0.0 }
 0x287   :  { %v1476_v33 = vmax.f32 %v1409_v20, 0.0 }
 0x288   :  { %v1475_v63 = vmax.f32 %v1231_v43, 0.0  ;;  %v1726_v42 = vmul.f32 %v3211_v22, %v1470_v2 }
 0x289   :  { %v1235_v50 = vpop.f32.mrf.mxu3 }
 0x28b   :  { %v1143_v37 = vpop.f32.mrf.mxu2 }
 0x28c   :  { %v3216_v31 = vpop.f32.mrf.mxu1  ;;  %v1144_v61 = vadd.f32 %v1143_v37, %v3062_v45  ;;  %v1677_v6 = vpop.permute.xlu2 %1676 }
 0x28e   :  { %v1233_v21 = vadd.f32 %v1232_v19, %v1144_v61  ;;  %v1324_v4 = vpop.f32.mrf.mxu0  ;;  %v1729_v19 = vmul.f32 %v3222_v10, %v1473_v44 }
 0x290   :  { %v1477_v52 = vmax.f32 %v1233_v21, 0.0  ;;  %v1767_v35 = vadd.f32 %v1766_v25, %v1729_v19  ;;  %v1325_v21 = vadd.f32 %v1324_v4, %v3072_v46 }
 0x291   :  { %v1237_v12 = vpop.f32.mrf.mxu3 }
 0x293   :  { %v1146_v1 = vpop.f32.mrf.mxu2 }
 0x294   :  { %v3226_v58 = vpop.f32.mrf.mxu1  ;;  %v1147_v32 = vadd.f32 %v1146_v1, %v3072_v46  ;;  %v1317_v1 = vadd.f32 %v1316_v54, %v3054_v8  ;;  %v1472_v54 = vmax.f32 %v1404_v36, 0.0 }
 0x296   :  { %v1236_v11 = vadd.f32 %v1235_v50, %v1147_v32  ;;  %v1731_v50 = vmul.f32 %v3232_v28, %v1475_v63  ;;  %v1406_v9 = vadd.f32 %v1405_v0, %v1317_v1  ;;  %v1800_v32 = vadd.f32 %v3200_v29, %v1722_v49  ;;  %v1326_v44 = vpop.f32.mrf.mxu0 }
 0x297   :  { %v1728_v13 = vmul.f32 %v3220_v53, %v1472_v54  ;;  %v1414_v63 = vadd.f32 %v3226_v58, %v1325_v21  ;;  %v1327_v22 = vadd.f32 %v1326_v44, %v3078_v18 }
 0x298   :  { %v1768_v56 = vadd.f32 %v1767_v35, %v1731_v50  ;;  %v1474_v14 = vmax.f32 %v1406_v9, 0.0 }
 0x299   :  { %v1240_v30 = vpop.f32.mrf.mxu3  ;;  %v1480_v39 = vmax.f32 %v1414_v63, 0.0 }
 0x29b   :  { %v1148_v24 = vpop.f32.mrf.mxu2 }
 0x29c   :  { %v1149_v26 = vadd.f32 %v1148_v24, %v3078_v18  ;;  %v1479_v24 = vmax.f32 %v1236_v11, 0.0  ;;  %v1415_v7 = vpop.f32.mrf.mxu1 }
 0x29d   :  { %v1416_v4 = vadd.f32 %v1415_v7, %v1327_v22 }
 0x29e   :  { %v1238_v37 = vadd.f32 %v1237_v12, %v1149_v26  ;;  %v1733_v12 = vmul.f32 %v3237_v17, %v1477_v52  ;;  %v1735_v0 = vmul.f32 %v3240_v62, %v1479_v24  ;;  %v1736_v24 = vmul.f32 %v3240_v62, %v1480_v39 }
 0x29f   :  { %v1482_v25 = vmax.f32 %v1416_v4, 0.0 }
 0x2a0   :  { %v1481_v59 = vmax.f32 %v1238_v37, 0.0  ;;  %v1769_v60 = vadd.f32 %v1768_v56, %v1733_v12  ;;  %v1732_v37 = vmul.f32 %v3232_v28, %v1476_v33 }
 0x2a1   :  { %v1242_v61 = vpop.f32.mrf.mxu3  ;;  %v1738_v2 = vmul.f32 %v1667_v48, %v1482_v25 }
 0x2a2   :  { %v1737_v34 = vmul.f32 %v1667_v48, %v1481_v59  ;;  %v1770_v29 = vadd.f32 %v1769_v60, %v1735_v0 }
 0x2a3   :  { %v1151_v15 = vpop.f32.mrf.mxu2 }
 0x2a4   :  { %v1152_v40 = vadd.f32 %v1151_v15, %v3076_v41  ;;  %v1418_v46 = vpop.f32.mrf.mxu1  ;;  %v1771_v23 = vadd.f32 %v1770_v29, %v1737_v34 }
 0x2a6   :  { %v1241_v16 = vadd.f32 %v1240_v30, %v1152_v40  ;;  %v1322_v30 = vadd.f32 %v1321_v57, %v3062_v45  ;;  %v1672_v45 = vpop.permute.xlu1 %1671  ;;  %v1801_v57 = vadd.f32 %v1800_v32, %v1724_v51 }
 0x2a8   :  { %v1483_v43 = vmax.f32 %v1241_v16, 0.0  ;;  %v1411_v15 = vadd.f32 %v3216_v31, %v1322_v30  ;;  %v1802_v40 = vadd.f32 %v1801_v57, %v1726_v42  ;;  %v1730_v31 = vmul.f32 %v3222_v10, %v1474_v14 }
 0x2a9   :  { %v1831_v14 = vlaneseq }
 0x2aa   :  { %v1739_v11 = vmul.f32 %v1672_v45, %v1483_v43  ;;  %v1478_v38 = vmax.f32 %v1411_v15, 0.0  ;;  %v1803_v53 = vadd.f32 %v1802_v40, %v1728_v13 }
 0x2ab   :  { %v1153_v27 = vpop.f32.mrf.mxu2  ;;  %vm1833_vm3 = vcmp.lt.s32.totalorder %v1831_v14, 256 }
 0x2ac   :  { %v1154_v8 = vadd.f32 %v1153_v27, %v3088_v5  ;;  %v1772_v58 = vadd.f32 %v1771_v23, %v1739_v11  ;;  %v1804_v1 = vadd.f32 %v1803_v53, %v1730_v31  ;;  %v1734_v18 = vmul.f32 %v3237_v17, %v1478_v38  ;;  %v1420_v55 = vpop.f32.mrf.mxu1 }
 0x2ae   :  { %v1243_v47 = vadd.f32 %v1242_v61, %v1154_v8  ;;  %v1805_v10 = vadd.f32 %v1804_v1, %v1732_v37 }
 0x2b0   :  { %v1485_v26 = vmax.f32 %v1243_v47, 0.0  ;;  %v1806_v49 = vadd.f32 %v1805_v10, %v1734_v18  ;;  %v1821_v47 = vpop.permute.xlu0 %1820 }
 0x2b2   :  { %v1741_v19 = vmul.f32 %v1677_v6, %v1485_v26  ;;  %v1807_v28 = vadd.f32 %v1806_v49, %v1736_v24 }
 0x2b3   :  { %v1329_v3 = vpop.f32.mrf.mxu2 }
 0x2b4   :  { %v1330_v52 = vadd.f32 %v1329_v3, %v3076_v41  ;;  %v1773_v50 = vadd.f32 %v1772_v58, %v1741_v19  ;;  %v1808_v35 = vadd.f32 %v1807_v28, %v1738_v2 }
 0x2b6   :  { %v1419_v36 = vadd.f32 %v1418_v46, %v1330_v52  ;;  %v1774_v9 = vrot.slane %v1773_v50, 4 }
 0x2b8   :  { %v1484_v16 = vmax.f32 %v1419_v36, 0.0  ;;  %v1775_v12 = vadd.f32 %v1774_v9, %v1773_v50 }
 0x2ba   :  { %v1740_v27 = vmul.f32 %v1672_v45, %v1484_v16  ;;  %v1776_v51 = vrot.slane %v1775_v12, 2 }
 0x2bb   :  { %v1331_v7 = vpop.f32.mrf.mxu2 }
 0x2bc   :  { %v1332_v41 = vadd.f32 %v1331_v7, %v3088_v5  ;;  %v1809_v17 = vadd.f32 %v1808_v35, %v1740_v27  ;;  %v1777_v62 = vadd.f32 %v1776_v51, %v1775_v12  ;;  %v1823_v5 = vperm.slane %v1821_v47, 0 }
 0x2be   :  { %v1421_v61 = vadd.f32 %v1420_v55, %v1332_v41  ;;  %v1778_v0 = vrot.slane %v1777_v62, 1 }
 0x2c0   :  { %v1486_v59 = vmax.f32 %v1421_v61, 0.0  ;;  %v1779_v42 = vadd.f32 %v1778_v0, %v1777_v62 }
 0x2c2   :  { %v1742_v8 = vmul.f32 %v1677_v6, %v1486_v59  ;;  %v1824_v44 = vadd.f32 %v1823_v5, %v1779_v42 }
 0x2c4   :  { %v1810_v54 = vadd.f32 %v1809_v17, %v1742_v8 }
 0x2c6   :  { %v1811_v20 = vrot.slane %v1810_v54, 4 }
 0x2c8   :  { %v1812_v30 = vadd.f32 %v1811_v20, %v1810_v54 }
 0x2ca   :  { %v1813_v56 = vrot.slane %v1812_v30, 2 }
 0x2cc   :  { %v1814_v43 = vadd.f32 %v1813_v56, %v1812_v30 }
 0x2ce   :  { %v1815_v48 = vrot.slane %v1814_v43, 1 }
 0x2d0   :  { %v1816_v32 = vadd.f32 %v1815_v48, %v1814_v43 }
 0x2d2   :  { %v1825_v15 = vadd.f32 %v1823_v5, %v1816_v32 }
 0x2d4   :  { %v1828_v60 = vrot.slane %v1825_v15, 7 }
 0x2d6   :  { %v1829_v21 = vsel %vm399_vm0, %v1824_v44, %v1828_v60 }
 0x2d7   :  { %1835 = vst.msk [vmem:[#allocation3] sm:$0x3] %vm1833_vm3, %v1829_v21 }
 0x2d8   :  { %1846 = dma.vmem_to_hbm [thread:$0]  %s1842_s19, 32, %s1844_s22, [#allocation4]  }
 0x2d9   :  { %2168 = dma.done.wait [#allocation4], 32  }
 0x2da   :  { %2169 = vsyncadd [#allocation4], 4294967264 }
 0x2db   :  { %1851 = vsyncpa [#allocation4], 1 }

</bundles_post_ra>
